<compile_context>
chip_gen: v5e
topology: v5e:2x2
jax: 0.10.0
libtpu: 0.0.40
codegen_flags: <defaults>
</compile_context>

<pallas_src>
import functools

import jax
import jax.numpy as jnp
from jax.experimental import pallas as pl
from jax.experimental.pallas import tpu as pltpu

EPS = 1e-5  # nn.BatchNorm2d default eps


def _round_up(x, m):
    return (x + m - 1) // m * m


def conv_stats_kernel(x_ref, w_ref, mask_ref, y_ref, stats_ref, *, TH, Wp):
    """Pass 1: 3x3 conv as 9 shifted MXU matmuls + per-channel sum/sumsq accum.

    x_ref:     (1, 1, (TH+3)*Wp, Cinp)  flattened padded row tile (with halo)
    w_ref:     (9, Cinp, Coutp)         weights, (kh*3+kw) major
    mask_ref:  (TH*Wp, 1)               1.0 on valid output columns, 0.0 on the
                                        Wp-Wo wrap-around "garbage" columns
    y_ref:     (1, 1, TH*Wp, Coutp)     raw conv output tile (lane-dense)
    stats_ref: (2, Coutp)               [sum; sum of squares], grid-resident
    """
    P = TH * Wp
    coutp = w_ref.shape[-1]
    x = x_ref[0, 0]                                        # ((TH+3)*Wp, Cinp)

    acc = jnp.zeros((P, coutp), jnp.float32)
    for kh in range(3):
        for kw in range(3):
            s = kh * Wp + kw                               # static slab offset
            acc = acc + jnp.dot(x[s:s + P, :], w_ref[kh * 3 + kw],
                                preferred_element_type=jnp.float32)
    y_ref[0, 0] = acc

    # Per-channel statistics over valid output pixels only.
    yv = acc * mask_ref[...]                               # zero garbage cols
    upd = jnp.concatenate(
        [jnp.sum(yv, axis=0, keepdims=True),               # sum
         jnp.sum(yv * acc, axis=0, keepdims=True)],        # sum of squares
        axis=0)                                            # (2, Coutp)

    @pl.when((pl.program_id(0) == 0) & (pl.program_id(1) == 0))
    def _():
        stats_ref[...] = jnp.zeros_like(stats_ref)

    stats_ref[...] += upd


def bn_relu_kernel(y_ref, scale_ref, shift_ref, o_ref, *, relu_slope):
    """Pass 2: y * scale + shift (folded BN affine) then ReLU / LeakyReLU."""
    y = y_ref[...] * scale_ref[...] + shift_ref[...]
    if relu_slope == 0.0:
        y = jnp.maximum(y, 0.0)
    else:
        y = jnp.where(y >= 0.0, y, relu_slope * y)
    o_ref[...] = y.astype(o_ref.dtype)


def cbr2d_forward(x_nchw, weight, bias, gamma, beta, *,
                  stride=1, padding=1, relu=0.0, row_tile=None):
    """x_nchw: (N, Cin, H, W) f32; weight: (Cout, Cin, 3, 3); bias/gamma/beta: (Cout,)."""
    N, Cin, H, W = x_nchw.shape
    Cout, _, K, _ = weight.shape
    assert K == 3 and stride == 1 and padding == 1, "module defaults only"

    Ho, Wo = H, W
    Wp = W + 2
    Cinp = _round_up(Cin, 8)         # sublane-aligned contraction dim
    Coutp = _round_up(Cout, 128)     # lane-dense output channels

    # Row-tile size: largest divisor of Ho keeping the tile ~<=1024 sublanes.
    if row_tile is None:
        row_tile = 1
        for d in range(1, Ho + 1):
            if Ho % d == 0 and d * Wp <= 1024:
                row_tile = d
    TH = row_tile
    assert Ho % TH == 0, "row_tile must divide output height"
    nT = Ho // TH
    THp = TH + 3                      # 2 halo rows + 1 slack row for slab shifts
    P = TH * Wp

    # ---------------- layout glue (one-time, in XLA) ------------------------
    x = jnp.transpose(x_nchw, (0, 2, 3, 1)).astype(jnp.float32)      # NHWC
    x = jnp.pad(x, ((0, 0), (1, 2), (1, 1), (0, Cinp - Cin)))        # pad H,W,C
    rows = jnp.arange(nT)[:, None] * TH + jnp.arange(THp)[None, :]   # (nT, THp)
    xt = x[:, rows]                                                  # (N,nT,THp,Wp,Cinp)
    xt = xt.reshape(N, nT, THp * Wp, Cinp)

    # torch weight (Cout, Cin, kh, kw) -> (kh*kw, Cinp, Coutp), zero padded.
    w2 = jnp.transpose(weight, (2, 3, 1, 0)).astype(jnp.float32)
    w2 = jnp.pad(w2, ((0, 0), (0, 0), (0, Cinp - Cin), (0, Coutp - Cout)))
    w2 = w2.reshape(K * K, Cinp, Coutp)
    # Conv bias dropped: a per-channel constant cancels exactly under
    # training-mode BatchNorm (it only shifts the mean, which is subtracted).
    del bias

    mask = ((jnp.arange(P) % Wp) < Wo).astype(jnp.float32).reshape(P, 1)

    # ---------------- pass 1: conv + per-channel sum / sumsq ----------------
    # TODO(synk): cast matmul inputs to bf16 on v6e for MXU rate / DMA bytes
    #             (kept f32 here to match the f32 reference bitwise-closely).
    k1 = functools.partial(conv_stats_kernel, TH=TH, Wp=Wp)
    flops = 2 * N * nT * P * Cinp * Coutp * 9
    bytes_accessed = (xt.size + w2.size + mask.size + N * nT * P * Coutp) * 4
    y_conv, stats = pl.pallas_call(
        k1,
        grid=(N, nT),
        in_specs=[
            pl.BlockSpec((1, 1, THp * Wp, Cinp), lambda n, t: (n, t, 0, 0)),
            pl.BlockSpec((K * K, Cinp, Coutp), lambda n, t: (0, 0, 0)),
            pl.BlockSpec((P, 1), lambda n, t: (0, 0)),
        ],
        out_specs=[
            pl.BlockSpec((1, 1, P, Coutp), lambda n, t: (n, t, 0, 0)),
            pl.BlockSpec((2, Coutp), lambda n, t: (0, 0)),   # resident accumulator
        ],
        out_shape=[
            jax.ShapeDtypeStruct((N, nT, P, Coutp), jnp.float32),
            jax.ShapeDtypeStruct((2, Coutp), jnp.float32),
        ],
        compiler_params=pltpu.CompilerParams(
            dimension_semantics=("arbitrary", "arbitrary"),  # exact global stats
            vmem_limit_bytes=32 * 1024 * 1024),
        cost_estimate=pl.CostEstimate(flops=flops, transcendentals=0,
                                      bytes_accessed=bytes_accessed),
    )(xt, w2, mask)

    # -------- finalize BN affine (tiny per-channel math, plain XLA) ---------
    cnt = jnp.float32(N * Ho * Wo)
    mean = stats[0] / cnt
    var = jnp.maximum(stats[1] / cnt - mean * mean, 0.0)    # E[y^2] - E[y]^2
    inv = jax.lax.rsqrt(var + EPS)
    gamma_p = jnp.pad(gamma.astype(jnp.float32), (0, Coutp - Cout))
    beta_p = jnp.pad(beta.astype(jnp.float32), (0, Coutp - Cout))
    scale = (gamma_p * inv).reshape(1, Coutp)
    shift = (beta_p - mean * gamma_p * inv).reshape(1, Coutp)

    # ---------------- pass 2: normalize + ReLU ------------------------------
    k2 = functools.partial(bn_relu_kernel, relu_slope=float(relu))
    out_p = pl.pallas_call(
        k2,
        grid=(N, nT),
        in_specs=[
            pl.BlockSpec((1, 1, P, Coutp), lambda n, t: (n, t, 0, 0)),
            pl.BlockSpec((1, Coutp), lambda n, t: (0, 0)),
            pl.BlockSpec((1, Coutp), lambda n, t: (0, 0)),
        ],
        out_specs=pl.BlockSpec((1, 1, P, Coutp), lambda n, t: (n, t, 0, 0)),
        out_shape=jax.ShapeDtypeStruct((N, nT, P, Coutp), jnp.float32),
        compiler_params=pltpu.CompilerParams(
            dimension_semantics=("parallel", "parallel"),
            vmem_limit_bytes=32 * 1024 * 1024),
    )(y_conv, scale, shift)

    # ---------------- layout glue back to NCHW ------------------------------
    out = out_p.reshape(N, nT, TH, Wp, Coutp)[:, :, :, :Wo, :Cout]
    out = out.reshape(N, Ho, Wo, Cout)
    return jnp.transpose(out, (0, 3, 1, 2))


def _reference(x, weight, bias, gamma, beta):
    y = jax.lax.conv_general_dilated(
        x, weight, window_strides=(1, 1), padding=((1, 1), (1, 1)),
        dimension_numbers=("NCHW", "OIHW", "NCHW"))
    y = y + bias.reshape(1, -1, 1, 1)
    mean = y.mean(axis=(0, 2, 3), keepdims=True)
    var = ((y - mean) ** 2).mean(axis=(0, 2, 3), keepdims=True)
    y = (y - mean) * jax.lax.rsqrt(var + EPS)
    y = y * gamma.reshape(1, -1, 1, 1) + beta.reshape(1, -1, 1, 1)
    return jnp.maximum(y, 0.0)


if __name__ == "__main__":
    N, Cin, Cout, H, W, K = 2, 4, 8, 16, 16, 3

    key = jax.random.PRNGKey(0)
    kx, kw, kb = jax.random.split(key, 3)
    x = jax.random.normal(kx, (N, Cin, H, W), dtype=jnp.float32)
    weight = jax.random.normal(kw, (Cout, Cin, K, K), dtype=jnp.float32) * 0.1
    bias = jax.random.normal(kb, (Cout,), dtype=jnp.float32) * 0.1
    gamma = jnp.ones((Cout,), dtype=jnp.float32)   # BatchNorm2d affine init
    beta = jnp.zeros((Cout,), dtype=jnp.float32)

    # row_tile=8 -> 2 row tiles per image: exercises the tiled grid and the
    # cross-tile BatchNorm statistics accumulation.
    out = cbr2d_forward(x, weight, bias, gamma, beta,
                        stride=1, padding=1, relu=0.0, row_tile=8)
    out = jax.block_until_ready(out)

    ref = jax.block_until_ready(_reference(x, weight, bias, gamma, beta))
    assert out.shape == (N, Cout, H, W)
    assert jnp.allclose(out, ref, atol=1e-3, rtol=1e-3), float(jnp.max(jnp.abs(out - ref)))

    print("KERNEL_OK")
</pallas_src>

<mosaic_0001>
module attributes {stable_mosaic.version = 11 : i64} {
  func.func @conv_stats_kernel(%arg0: i32, %arg1: i32, %arg2: memref<1x1x198x8xf32, #tpu.memory_space<vmem>>, %arg3: memref<9x8x128xf32, #tpu.memory_space<vmem>>, %arg4: memref<144x1xf32, #tpu.memory_space<vmem>>, %arg5: memref<1x1x144x128xf32, #tpu.memory_space<vmem>>, %arg6: memref<2x128xf32, #tpu.memory_space<vmem>>) attributes {dimension_semantics = [#tpu.dimension_semantics<arbitrary>, #tpu.dimension_semantics<arbitrary>], iteration_bounds = array<i64: 2, 2>, scalar_prefetch = 0 : i64, scratch_operands = 0 : i64, tpu.core_type = #tpu.core_type<tc>, window_params = [{transform_indices = @transform_0, window_bounds = array<i64: 1, 1, 198, 8>}, {pipeline_mode = #tpu.pipeline_mode<synchronous>, transform_indices = @transform_1, window_bounds = array<i64: 9, 8, 128>}, {pipeline_mode = #tpu.pipeline_mode<synchronous>, transform_indices = @transform_2, window_bounds = array<i64: 144, 1>}, {transform_indices = @transform_3, window_bounds = array<i64: 1, 1, 144, 128>}, {pipeline_mode = #tpu.pipeline_mode<synchronous>, transform_indices = @transform_4, window_bounds = array<i64: 2, 128>}]} {
    %c0 = arith.constant 0 : index
    %c0_0 = arith.constant 0 : index
    %c0_1 = arith.constant 0 : index
    %c0_2 = arith.constant 0 : index
    %0 = vector.load %arg2[%c0, %c0_0, %c0_1, %c0_2] : memref<1x1x198x8xf32, #tpu.memory_space<vmem>>, vector<1x1x198x8xf32>
    %1 = vector.shape_cast %0 : vector<1x1x198x8xf32> to vector<198x8xf32>
    %cst = arith.constant 0.000000e+00 : f32
    %2 = vector.broadcast %cst : f32 to vector<144x128xf32>
    %3 = vector.extract_strided_slice %1 {offsets = [0, 0], sizes = [144, 8], strides = [1, 1]} : vector<198x8xf32> to vector<144x8xf32>
    %c0_3 = arith.constant 0 : index
    %c0_4 = arith.constant 0 : index
    %c0_5 = arith.constant 0 : index
    %4 = vector.load %arg3[%c0_3, %c0_4, %c0_5] : memref<9x8x128xf32, #tpu.memory_space<vmem>>, vector<1x8x128xf32>
    %5 = vector.shape_cast %4 : vector<1x8x128xf32> to vector<8x128xf32>
    %cst_6 = arith.constant dense<0.000000e+00> : vector<144x128xf32>
    %6 = tpu.matmul %3, %5, %cst_6 {dimension_numbers = #tpu.dot_dimension_numbers<[1], [0], [0], [1], [0, 0, 1, 1], [], []>} : vector<144x8xf32>, vector<8x128xf32>, vector<144x128xf32> -> vector<144x128xf32>
    %7 = arith.addf %2, %6 : vector<144x128xf32>
    %8 = vector.extract_strided_slice %1 {offsets = [1, 0], sizes = [144, 8], strides = [1, 1]} : vector<198x8xf32> to vector<144x8xf32>
    %c1 = arith.constant 1 : index
    %c0_7 = arith.constant 0 : index
    %c0_8 = arith.constant 0 : index
    %9 = vector.load %arg3[%c1, %c0_7, %c0_8] : memref<9x8x128xf32, #tpu.memory_space<vmem>>, vector<1x8x128xf32>
    %10 = vector.shape_cast %9 : vector<1x8x128xf32> to vector<8x128xf32>
    %cst_9 = arith.constant dense<0.000000e+00> : vector<144x128xf32>
    %11 = tpu.matmul %8, %10, %cst_9 {dimension_numbers = #tpu.dot_dimension_numbers<[1], [0], [0], [1], [0, 0, 1, 1], [], []>} : vector<144x8xf32>, vector<8x128xf32>, vector<144x128xf32> -> vector<144x128xf32>
    %12 = arith.addf %7, %11 : vector<144x128xf32>
    %13 = vector.extract_strided_slice %1 {offsets = [2, 0], sizes = [144, 8], strides = [1, 1]} : vector<198x8xf32> to vector<144x8xf32>
    %c2 = arith.constant 2 : index
    %c0_10 = arith.constant 0 : index
    %c0_11 = arith.constant 0 : index
    %14 = vector.load %arg3[%c2, %c0_10, %c0_11] : memref<9x8x128xf32, #tpu.memory_space<vmem>>, vector<1x8x128xf32>
    %15 = vector.shape_cast %14 : vector<1x8x128xf32> to vector<8x128xf32>
    %cst_12 = arith.constant dense<0.000000e+00> : vector<144x128xf32>
    %16 = tpu.matmul %13, %15, %cst_12 {dimension_numbers = #tpu.dot_dimension_numbers<[1], [0], [0], [1], [0, 0, 1, 1], [], []>} : vector<144x8xf32>, vector<8x128xf32>, vector<144x128xf32> -> vector<144x128xf32>
    %17 = arith.addf %12, %16 : vector<144x128xf32>
    %18 = vector.extract_strided_slice %1 {offsets = [18, 0], sizes = [144, 8], strides = [1, 1]} : vector<198x8xf32> to vector<144x8xf32>
    %c3 = arith.constant 3 : index
    %c0_13 = arith.constant 0 : index
    %c0_14 = arith.constant 0 : index
    %19 = vector.load %arg3[%c3, %c0_13, %c0_14] : memref<9x8x128xf32, #tpu.memory_space<vmem>>, vector<1x8x128xf32>
    %20 = vector.shape_cast %19 : vector<1x8x128xf32> to vector<8x128xf32>
    %cst_15 = arith.constant dense<0.000000e+00> : vector<144x128xf32>
    %21 = tpu.matmul %18, %20, %cst_15 {dimension_numbers = #tpu.dot_dimension_numbers<[1], [0], [0], [1], [0, 0, 1, 1], [], []>} : vector<144x8xf32>, vector<8x128xf32>, vector<144x128xf32> -> vector<144x128xf32>
    %22 = arith.addf %17, %21 : vector<144x128xf32>
    %23 = vector.extract_strided_slice %1 {offsets = [19, 0], sizes = [144, 8], strides = [1, 1]} : vector<198x8xf32> to vector<144x8xf32>
    %c4 = arith.constant 4 : index
    %c0_16 = arith.constant 0 : index
    %c0_17 = arith.constant 0 : index
    %24 = vector.load %arg3[%c4, %c0_16, %c0_17] : memref<9x8x128xf32, #tpu.memory_space<vmem>>, vector<1x8x128xf32>
    %25 = vector.shape_cast %24 : vector<1x8x128xf32> to vector<8x128xf32>
    %cst_18 = arith.constant dense<0.000000e+00> : vector<144x128xf32>
    %26 = tpu.matmul %23, %25, %cst_18 {dimension_numbers = #tpu.dot_dimension_numbers<[1], [0], [0], [1], [0, 0, 1, 1], [], []>} : vector<144x8xf32>, vector<8x128xf32>, vector<144x128xf32> -> vector<144x128xf32>
    %27 = arith.addf %22, %26 : vector<144x128xf32>
    %28 = vector.extract_strided_slice %1 {offsets = [20, 0], sizes = [144, 8], strides = [1, 1]} : vector<198x8xf32> to vector<144x8xf32>
    %c5 = arith.constant 5 : index
    %c0_19 = arith.constant 0 : index
    %c0_20 = arith.constant 0 : index
    %29 = vector.load %arg3[%c5, %c0_19, %c0_20] : memref<9x8x128xf32, #tpu.memory_space<vmem>>, vector<1x8x128xf32>
    %30 = vector.shape_cast %29 : vector<1x8x128xf32> to vector<8x128xf32>
    %cst_21 = arith.constant dense<0.000000e+00> : vector<144x128xf32>
    %31 = tpu.matmul %28, %30, %cst_21 {dimension_numbers = #tpu.dot_dimension_numbers<[1], [0], [0], [1], [0, 0, 1, 1], [], []>} : vector<144x8xf32>, vector<8x128xf32>, vector<144x128xf32> -> vector<144x128xf32>
    %32 = arith.addf %27, %31 : vector<144x128xf32>
    %33 = vector.extract_strided_slice %1 {offsets = [36, 0], sizes = [144, 8], strides = [1, 1]} : vector<198x8xf32> to vector<144x8xf32>
    %c6 = arith.constant 6 : index
    %c0_22 = arith.constant 0 : index
    %c0_23 = arith.constant 0 : index
    %34 = vector.load %arg3[%c6, %c0_22, %c0_23] : memref<9x8x128xf32, #tpu.memory_space<vmem>>, vector<1x8x128xf32>
    %35 = vector.shape_cast %34 : vector<1x8x128xf32> to vector<8x128xf32>
    %cst_24 = arith.constant dense<0.000000e+00> : vector<144x128xf32>
    %36 = tpu.matmul %33, %35, %cst_24 {dimension_numbers = #tpu.dot_dimension_numbers<[1], [0], [0], [1], [0, 0, 1, 1], [], []>} : vector<144x8xf32>, vector<8x128xf32>, vector<144x128xf32> -> vector<144x128xf32>
    %37 = arith.addf %32, %36 : vector<144x128xf32>
    %38 = vector.extract_strided_slice %1 {offsets = [37, 0], sizes = [144, 8], strides = [1, 1]} : vector<198x8xf32> to vector<144x8xf32>
    %c7 = arith.constant 7 : index
    %c0_25 = arith.constant 0 : index
    %c0_26 = arith.constant 0 : index
    %39 = vector.load %arg3[%c7, %c0_25, %c0_26] : memref<9x8x128xf32, #tpu.memory_space<vmem>>, vector<1x8x128xf32>
    %40 = vector.shape_cast %39 : vector<1x8x128xf32> to vector<8x128xf32>
    %cst_27 = arith.constant dense<0.000000e+00> : vector<144x128xf32>
    %41 = tpu.matmul %38, %40, %cst_27 {dimension_numbers = #tpu.dot_dimension_numbers<[1], [0], [0], [1], [0, 0, 1, 1], [], []>} : vector<144x8xf32>, vector<8x128xf32>, vector<144x128xf32> -> vector<144x128xf32>
    %42 = arith.addf %37, %41 : vector<144x128xf32>
    %43 = vector.extract_strided_slice %1 {offsets = [38, 0], sizes = [144, 8], strides = [1, 1]} : vector<198x8xf32> to vector<144x8xf32>
    %c8 = arith.constant 8 : index
    %c0_28 = arith.constant 0 : index
    %c0_29 = arith.constant 0 : index
    %44 = vector.load %arg3[%c8, %c0_28, %c0_29] : memref<9x8x128xf32, #tpu.memory_space<vmem>>, vector<1x8x128xf32>
    %45 = vector.shape_cast %44 : vector<1x8x128xf32> to vector<8x128xf32>
    %cst_30 = arith.constant dense<0.000000e+00> : vector<144x128xf32>
    %46 = tpu.matmul %43, %45, %cst_30 {dimension_numbers = #tpu.dot_dimension_numbers<[1], [0], [0], [1], [0, 0, 1, 1], [], []>} : vector<144x8xf32>, vector<8x128xf32>, vector<144x128xf32> -> vector<144x128xf32>
    %47 = arith.addf %42, %46 : vector<144x128xf32>
    %c0_31 = arith.constant 0 : index
    %c0_32 = arith.constant 0 : index
    %c0_33 = arith.constant 0 : index
    %c0_34 = arith.constant 0 : index
    %48 = vector.load %arg5[%c0_31, %c0_32, %c0_33, %c0_34] : memref<1x1x144x128xf32, #tpu.memory_space<vmem>>, vector<1x1x144x128xf32>
    %49 = vector.shape_cast %48 : vector<1x1x144x128xf32> to vector<144x128xf32>
    %50 = vector.shape_cast %47 : vector<144x128xf32> to vector<1x1x144x128xf32>
    tpu.vector_store %arg5[%c0_31, %c0_32, %c0_33, %c0_34], %50 {strides = array<i32>} : memref<1x1x144x128xf32, #tpu.memory_space<vmem>>, vector<1x1x144x128xf32>,
    %c0_35 = arith.constant 0 : index
    %c0_36 = arith.constant 0 : index
    %51 = vector.load %arg4[%c0_35, %c0_36] : memref<144x1xf32, #tpu.memory_space<vmem>>, vector<144x1xf32>
    %52 = vector.broadcast %51 : vector<144x1xf32> to vector<144x128xf32>
    %53 = arith.mulf %47, %52 : vector<144x128xf32>
    %cst_37 = arith.constant dense<0.000000e+00> : vector<128xf32>
    %54 = vector.multi_reduction <add>, %53, %cst_37 [0] : vector<144x128xf32> to vector<128xf32>
    %55 = vector.shape_cast %54 : vector<128xf32> to vector<1x128xf32>
    %56 = arith.mulf %53, %47 : vector<144x128xf32>
    %cst_38 = arith.constant dense<0.000000e+00> : vector<128xf32>
    %57 = vector.multi_reduction <add>, %56, %cst_38 [0] : vector<144x128xf32> to vector<128xf32>
    %58 = vector.shape_cast %57 : vector<128xf32> to vector<1x128xf32>
    %59 = tpu.concatenate %55, %58 in 0 : vector<1x128xf32>, vector<1x128xf32> -> vector<2x128xf32>
    %c0_i32 = arith.constant 0 : i32
    %60 = arith.cmpi eq, %arg0, %c0_i32 : i32
    %c0_i32_39 = arith.constant 0 : i32
    %61 = arith.cmpi eq, %arg1, %c0_i32_39 : i32
    %62 = arith.andi %60, %61 : i1
    %63 = arith.extui %62 : i1 to i32
    %c0_i32_40 = arith.constant 0 : i32
    %64 = arith.cmpi ne, %63, %c0_i32_40 : i32
    scf.if %64 {
      %cst_45 = arith.constant 0.000000e+00 : f32
      %68 = vector.broadcast %cst_45 : f32 to vector<2x128xf32>
      %c0_46 = arith.constant 0 : index
      %c0_47 = arith.constant 0 : index
      %69 = vector.load %arg6[%c0_46, %c0_47] : memref<2x128xf32, #tpu.memory_space<vmem>>, vector<2x128xf32>
      tpu.vector_store %arg6[%c0_46, %c0_47], %68 {strides = array<i32>} : memref<2x128xf32, #tpu.memory_space<vmem>>, vector<2x128xf32>,
    } else {
    }
    %c0_41 = arith.constant 0 : index
    %c0_42 = arith.constant 0 : index
    %65 = vector.load %arg6[%c0_41, %c0_42] : memref<2x128xf32, #tpu.memory_space<vmem>>, vector<2x128xf32>
    %66 = arith.addf %65, %59 : vector<2x128xf32>
    %c0_43 = arith.constant 0 : index
    %c0_44 = arith.constant 0 : index
    %67 = vector.load %arg6[%c0_43, %c0_44] : memref<2x128xf32, #tpu.memory_space<vmem>>, vector<2x128xf32>
    tpu.vector_store %arg6[%c0_43, %c0_44], %66 {strides = array<i32>} : memref<2x128xf32, #tpu.memory_space<vmem>>, vector<2x128xf32>,
    return
  }
  func.func @transform_0(%arg0: i32, %arg1: i32) -> (i32, i32, i32, i32) {
    %c0_i32 = arith.constant 0 : i32
    %c0_i32_0 = arith.constant 0 : i32
    %c0_i32_1 = arith.constant 0 : i32
    return %arg0, %arg1, %c0_i32, %c0_i32_0 : i32, i32, i32, i32
  }
  func.func @transform_1(%arg0: i32, %arg1: i32) -> (i32, i32, i32) {
    %c0_i32 = arith.constant 0 : i32
    %c0_i32_0 = arith.constant 0 : i32
    %c0_i32_1 = arith.constant 0 : i32
    %c0_i32_2 = arith.constant 0 : i32
    return %c0_i32, %c0_i32_0, %c0_i32_1 : i32, i32, i32
  }
  func.func @transform_2(%arg0: i32, %arg1: i32) -> (i32, i32) {
    %c0_i32 = arith.constant 0 : i32
    %c0_i32_0 = arith.constant 0 : i32
    %c0_i32_1 = arith.constant 0 : i32
    return %c0_i32, %c0_i32_0 : i32, i32
  }
  func.func @transform_3(%arg0: i32, %arg1: i32) -> (i32, i32, i32, i32) {
    %c0_i32 = arith.constant 0 : i32
    %c0_i32_0 = arith.constant 0 : i32
    %c0_i32_1 = arith.constant 0 : i32
    return %arg0, %arg1, %c0_i32, %c0_i32_0 : i32, i32, i32, i32
  }
  func.func @transform_4(%arg0: i32, %arg1: i32) -> (i32, i32) {
    %c0_i32 = arith.constant 0 : i32
    %c0_i32_0 = arith.constant 0 : i32
    %c0_i32_1 = arith.constant 0 : i32
    return %c0_i32, %c0_i32_0 : i32, i32
  }
}

</mosaic_0001>

<bundles_post_ra>
// kernel: tpu_custom_call.1
= control target key start
LH: loop header
LB: loop body
LE: loop exit
PB: predicated region body
PF: predicated region fallthrough
CT: control target
= control target key end

     0   :  { %s3173_s0 = inlined_call_operand.vmem [shape: f32[2,2,198,8], index: 0, kind: input, shape index: {}]   ;;  %s3174_s1 = inlined_call_operand.vmem [shape: f32[9,8,128], index: 1, kind: input, shape index: {}]   ;;  %s3175_s2 = inlined_call_operand.vmem [shape: f32[144,1], index: 2, kind: input, shape index: {}]   ;;  %s3176_s3 = inlined_call_operand.hbm [shape: f32[2,2,144,128], index: 3, kind: output, shape index: {0}]   ;;  %s3177_s4 = inlined_call_operand.hbm [shape: f32[2,128], index: 4, kind: output, shape index: {1}]  }
   0x1   :  { %3179 = sst [smem:[#allocation8_spill]] %s3173_s0 }
   0x2   :  { %3180 = sst [smem:[#allocation9_spill]] %s3174_s1 }
   0x3   :  { %10 = vsyncpa [#allocation3], 0 }
   0x4   :  { %12 = vsyncpa [#allocation3 + $0x1], 0 }
   0x5   :  { %13 = vsyncpa [#allocation5], 0  ;;  %s2327_s15 = smov 0   ;;  %s2329_s16 = smov 0  }
   0x6   :  { %s2331_s17 = smov 0   ;;  %s2333_s18 = smov 0  }
   0x7   :  { %s2335_s19 = smov 0   ;;  %s2337_s20 = smov 0  }
   0x8   :  { %s2339_s21 = smov 0   ;;  %s2341_s22 = smov 0  }
   0x9 LB: > { %s1895_s23 = sadd.s32 4294967295, %s2295_s22   ;;  %s1896_s24 = sadd.s32 4294967294, %s2295_s22   ;;  %s2295_s22 = sphi %s2341_s22, %s19_s22   ;;  %s2291_s21 = sphi %s2339_s21, %s3194_s21   ;;  %s2287_s20 = sphi %s2337_s20, %s3193_s20   ;;  %s2283_s19 = sphi %s2335_s19, %s3192_s19   ;;  %s2279_s18 = sphi %s2333_s18, %s3191_s18   ;;  %s2275_s17 = sphi %s2331_s17, %s3190_s17   ;;  %s2271_s16 = sphi %s2329_s16, %s3189_s16   ;;  %s2267_s15 = sphi %s2327_s15, %s3188_s15  }
   0xa   : > { %s28_s25 = sadd.s32 1, %s2287_s20  ;;  %s31_s26 = sadd.s32 1, %s2291_s21 }
   0xb   : > { %p29_p0 = scmp.ge.s32.totalorder %s28_s25, 2  ;;  %p120_p1 = scmp.ne.s32.totalorder %s2275_s17, %s2271_s16 }
   0xc   : > { %p2373_p2 = scmp.eq.s32.totalorder %s1895_s23, 3  ;;  %p126_p5 = scmp.ne.s32.totalorder %s2271_s16, %s2267_s15 }
   0xd   : > { %s3196_s25 = smov (%p29_p0, %s28_s25), 0  ;;  %s3198_s26 = smov (!%p29_p0, %s31_s26), %s2291_s21 }
   0xe   : > { %s106_s28 = ssub.s32 %s2287_s20, %s3196_s25  ;;  %p2384_p3 = por %p2373_p2, %p120_p1 }
   0xf   : > { %p33_p4 = scmp.ge.s32.totalorder %s3198_s26, 2  ;;  %p127_p6 = scmp.eq.s32.totalorder %s1896_s24, 3 }
  0x10   : > { %p1899_p7 = scmp.ge.s32.totalorder %s2295_s22, 1  ;;  %p184_p9 = scmp.lt.s32.totalorder %s2295_s22, 5 }
  0x11   : > { %s3200_s26 = smov (%p33_p4, %s3198_s26), 0  ;;  %p2393_p8 = por %p127_p6, %p126_p5 }
  0x12   : > { %s105_s5 = ssub.s32 %s2291_s21, %s3200_s26  ;;  %s110_s6 = sadd.s32 1, %s2275_s17 }
  0x13   : > { %s107_s7 = sor.u32 %s106_s28, %s105_s5  ;;  %p185_p10 = pnand %p1899_p7, %p184_p9 }
  0x14   : > { %p108_p11 = scmp.eq.s32.totalorder %s107_s7, 0  ;;  %s3184_s1 = sld [smem:[#allocation9_spill]] (!%p185_p10) }
  0x15   : > { %188 = sbr.rel (%p185_p10) target bundleno = 542 (0x21e), region = 32  ;;  %p214_p12 = scmp.lt.s32.totalorder (!%p185_p10), %s2283_s19, 1 }
  0x16   : > { %s2402_s8 = scalar_select %p108_p11, %s2275_s17, %s110_s6  }
  0x17   : > { %p216_p13 = scmp.lt.s32.totalorder (!%p185_p10), %s2279_s18, 1  ;;  %s3185_s0 = sld [smem:[#allocation8_spill]] (!%p185_p10) }
  0x18   : > { %p1758_p0 = scmp.eq.s32.totalorder (!%p185_p10), %s2283_s19, 0  ;;  %p1759_p1 = scmp.eq.s32.totalorder (!%p185_p10), %s2279_s18, 0 }
  0x1a   : > { %v1901_v0 = vld [vmem:[%s3184_s1 + $0x8] sm:$0xff]  ;;  %v1938_v1 = vld [vmem:[%s3184_s1 + $0x10] sm:$0xff]  ;;  %v246_v2 = vld [vmem:[%s3184_s1] sm:$0xff]  ;;  %s215_s6 = scalar_select %p214_p12, %s2283_s19, 1  ;;  %vm268_vm0 = vcmask 1046528   ;;  %vm306_vm1 = vcmask 64512  }
  0x1b   : > { %2076 = vmatpush.msra.mxu1 %v1901_v0  ;;  %2077 = vmatpush.msra.mxu2 %v1901_v0  ;;  %v1976_v3 = vld [vmem:[%s3184_s1 + $0x20] sm:$0xff]  ;;  %v1957_v4 = vld [vmem:[%s3184_s1 + $0x18] sm:$0xff]  ;;  %s217_s7 = scalar_select %p216_p13, %s2279_s18, 1  ;;  %v2014_v40 = vld [vmem:[%s3184_s1 + $0x30] sm:$0xff]  ;;  %vm523_vm2 = vcmask 1045504   ;;  %vm789_vm3 = vcmask 1044480  }
  0x1c   : > { %358 = vmatpush.msra.mxu0 %v1901_v0  ;;  %2078 = vmatpush.msra.mxu3 %v1901_v0  ;;  %s2081_s9 = smul.u32 50, %s215_s6  ;;  %v2033_v41 = vld [vmem:[%s3184_s1 + $0x38] sm:$0xff]  ;;  %v1995_v42 = vld [vmem:[%s3184_s1 + $0x28] sm:$0xff]  ;;  %v2052_v55 = vld [vmem:[%s3184_s1 + $0x40] sm:$0xff]  ;;  %vm1220_vm4 = vcmask 1042432   ;;  %vm954_vm5 = vcmask 1043456   ;;  %p3082_p4 = pnand %p1759_p1, %p1758_p0 }
  0x1d   : > { %612 = vmatpush.msrb.mxu2 %v1938_v1  ;;  %465 = vmatpush.msrb.mxu1 %v246_v2  ;;  %s2080_s10 = smul.u32 25, %s217_s7  ;;  %vm1385_vm6 = vcmask 1041408   ;;  %vm1756_vm7 = vcmask 1040384  }
  0x1e   : > { %878 = vmatpush.msrb.mxu0 %v1976_v3  ;;  %713 = vmatpush.msrb.mxu3 %v1957_v4 }
  0x1f   : > { %s220_s11 = sadd.s32 %s2081_s9, %s2080_s10 }
  0x20   : > { %s1900_s12 = sshll.u32 %s220_s11, 3 }
  0x21   : > { %s2426_s23 = scalar_lea.vmem %s3185_s0, %s1900_s12 }
  0x22   : > { %v2429_v5 = vld [vmem:[%s2426_s23 + $0x28] sm:$0xff]  ;;  %v2432_v6 = vld [vmem:[%s2426_s23 + $0x30] sm:$0xff]  ;;  %v2440_v10 = vld [vmem:[%s2426_s23 + $0x58] sm:$0xff] }
  0x23   : > { %v2435_v7 = vld [vmem:[%s2426_s23 + $0x50] sm:$0xff]  ;;  %v278_v8 = vrot.slane %v2429_v5, 1  ;;  %v280_v9 = vrot.slane %v2432_v6, 1  ;;  %v290_v12 = vrot.slane %v2440_v10, 1  ;;  %v2445_v13 = vld [vmem:[%s2426_s23 + $0x38] sm:$0xff]  ;;  %v2448_v14 = vld [vmem:[%s2426_s23] sm:$0xff] }
  0x24   : > { %v288_v11 = vrot.slane %v2435_v7, 1  ;;  %v2451_v15 = vld [vmem:[%s2426_s23 + $0x8] sm:$0xff]  ;;  %v2457_v17 = vld [vmem:[%s2426_s23 + $0x60] sm:$0xff]  ;;  %v269_v18 = vrot.slane %v2448_v14, 1  ;;  %v2462_v20 = vld [vmem:[%s2426_s23 + $0x78] sm:$0xff]  ;;  %v282_v24 = vrot.slane %v2445_v13, 1 }
  0x25   : > { %v281_v16 = vsel %vm268_vm0, %v278_v8, %v280_v9  ;;  %v270_v19 = vrot.slane %v2451_v15, 1  ;;  %v2469_v22 = vld [vmem:[%s2426_s23 + $0x10] sm:$0xff]  ;;  %v2472_v23 = vld [vmem:[%s2426_s23 + $0x80] sm:$0xff]  ;;  %v298_v26 = vrot.slane %v2462_v20, 1  ;;  %v292_v27 = vrot.slane %v2457_v17, 1  ;;  %v2483_v30 = vld [vmem:[%s2426_s23 + $0x88] sm:$0xff] }
  0x26   : > { %1907 = vmatmul.msk.f32.vlgmr.msra.gmra.mxu1 %vm306_vm1, %v281_v16  ;;  %v291_v21 = vsel %vm268_vm0, %v288_v11, %v290_v12  ;;  %v300_v28 = vrot.slane %v2472_v23, 1  ;;  %v272_v29 = vrot.slane %v2469_v22, 1  ;;  %v283_v32 = vsel %vm268_vm0, %v280_v9, %v282_v24  ;;  %v2490_v34 = vld [vmem:[%s2426_s23 + $0x40] sm:$0xff]  ;;  %v2494_v36 = vld [vmem:[%s2426_s23 + $0x68] sm:$0xff]  ;;  %v2499_v38 = vld [vmem:[%s2426_s23 + $0x18] sm:$0xff] }
  0x27   : > { %1912 = vmatmul.msk.f32.vlgmr.msra.gmra.mxu2 %vm306_vm1, %v291_v21  ;;  %v271_v25 = vsel %vm268_vm0, %v269_v18, %v270_v19  ;;  %v293_v33 = vsel %vm268_vm0, %v290_v12, %v292_v27  ;;  %v302_v35 = vrot.slane %v2483_v30, 1  ;;  %v284_v39 = vrot.slane %v2490_v34, 1  ;;  %v2517_v46 = vld [vmem:[%s2426_s23 + $0x90] sm:$0xff]  ;;  %1043 = vmatpush.msra.mxu1 %v1995_v42  ;;  %v2523_v49 = vld [vmem:[%s2426_s23 + $0x48] sm:$0xff]  ;;  %v2532_v53 = vld [vmem:[%s2426_s23 + $0x20] sm:$0xff] }
  0x28   : > { %1902 = vmatmul.msk.f32.vlgmr.msra.gmra.mxu0 %vm306_vm1, %v271_v25  ;;  %v301_v31 = vsel %vm268_vm0, %v298_v26, %v300_v28  ;;  %v273_v37 = vsel %vm268_vm0, %v270_v19, %v272_v29  ;;  %v294_v43 = vrot.slane %v2494_v36, 1  ;;  %1144 = vmatpush.msra.mxu2 %v2014_v40  ;;  %v274_v45 = vrot.slane %v2499_v38, 1  ;;  %v2527_v51 = vld [vmem:[%s2426_s23 + $0x70] sm:$0xff] }
  0x29   : > { %1917 = vmatmul.msk.f32.vlgmr.msra.gmra.mxu3 %vm306_vm1, %v301_v31  ;;  %v303_v44 = vsel %vm268_vm0, %v300_v28, %v302_v35  ;;  %v285_v47 = vsel %vm268_vm0, %v282_v24, %v284_v39  ;;  %v304_v50 = vrot.slane %v2517_v46, 1  ;;  %v286_v54 = vrot.slane %v2523_v49, 1  ;;  %1474 = vmatpush.msra.mxu0 %v2052_v55 }
  0x2a   : > { %1309 = vmatpush.msra.mxu3 %v2033_v41  ;;  %v295_v48 = vsel %vm268_vm0, %v292_v27, %v294_v43  ;;  %v275_v52 = vsel %vm268_vm0, %v272_v29, %v274_v45  ;;  %v296_v56 = vrot.slane %v2527_v51, 1  ;;  %v276_v58 = vrot.slane %v2532_v53, 1 }
  0x2b   : > { %v305_v57 = vsel %vm268_vm0, %v302_v35, %v304_v50  ;;  %v287_v59 = vsel %vm268_vm0, %v284_v39, %v286_v54  ;;  %v527_v61 = vrot.slane %v2469_v22, 2  ;;  %v529_v62 = vrot.slane %v2499_v38, 2 }
  0x2c   : > { %v297_v60 = vsel %vm268_vm0, %v294_v43, %v296_v56  ;;  %v277_v63 = vsel %vm268_vm0, %v274_v45, %v276_v58  ;;  %v289_v1 = vsel %vm268_vm0, %v286_v54, %v288_v11  ;;  %v299_v2 = vsel %vm268_vm0, %v296_v56, %v298_v26 }
  0x2d   : > { %v530_v0 = vsel %vm523_vm2, %v527_v61, %v529_v62  ;;  %v531_v3 = vrot.slane %v2532_v53, 2  ;;  %v279_v4 = vsel %vm268_vm0, %v276_v58, %v278_v8  ;;  %v524_v9 = vrot.slane %v2448_v14, 2 }
  0x2e   : > { %1908 = vmatmul.msk.f32.gmra.mxu1 %vm306_vm1, %v283_v32  ;;  %v525_v12 = vrot.slane %v2451_v15, 2  ;;  %v790_v16 = vrot.slane %v2469_v22, 3  ;;  %v791_v18 = vrot.slane %v2499_v38, 3  ;;  %v533_v19 = vrot.slane %v2429_v5, 2 }
  0x2f   : > { %1913 = vmatmul.msk.f32.gmra.mxu2 %vm306_vm1, %v293_v33  ;;  %v532_v11 = vsel %vm523_vm2, %v529_v62, %v531_v3  ;;  %v793_v25 = vrot.slane %v2532_v53, 3  ;;  %v535_v27 = vrot.slane %v2432_v6, 2  ;;  %v795_v29 = vrot.slane %v2429_v5, 3 }
  0x30   : > { %1903 = vmatmul.msk.f32.gmra.mxu0 %vm306_vm1, %v273_v37  ;;  %v526_v8 = vsel %vm523_vm2, %v524_v9, %v525_v12  ;;  %v792_v21 = vsel %vm789_vm3, %v790_v16, %v791_v18  ;;  %v534_v24 = vsel %vm523_vm2, %v531_v3, %v533_v19  ;;  %v528_v26 = vsel %vm523_vm2, %v525_v12, %v527_v61 }
  0x31   : > { %1918 = vmatmul.msk.f32.gmra.mxu3 %vm306_vm1, %v303_v44  ;;  %v794_v28 = vsel %vm789_vm3, %v791_v18, %v793_v25  ;;  %v537_v31 = vrot.slane %v2445_v13, 2  ;;  %v796_v32 = vsel %vm789_vm3, %v793_v25, %v795_v29  ;;  %v797_v33 = vrot.slane %v2432_v6, 3 }
  0x32   : > { %v539_v35 = vrot.slane %v2490_v34, 2  ;;  %v799_v40 = vrot.slane %v2445_v13, 3  ;;  %v541_v41 = vrot.slane %v2523_v49, 2  ;;  %v801_v44 = vrot.slane %v2490_v34, 3 }
  0x33   : > { %v798_v37 = vsel %vm789_vm3, %v795_v29, %v797_v33  ;;  %v543_v45 = vrot.slane %v2435_v7, 2  ;;  %v803_v50 = vrot.slane %v2523_v49, 3  ;;  %v805_v56 = vrot.slane %v2435_v7, 3 }
  0x34   : > { %v540_v39 = vsel %vm523_vm2, %v537_v31, %v539_v35  ;;  %v800_v42 = vsel %vm789_vm3, %v797_v33, %v799_v40  ;;  %v542_v43 = vsel %vm523_vm2, %v539_v35, %v541_v41  ;;  %v549_v61 = vrot.slane %v2494_v36, 2 }
  0x35   : > { %v804_v54 = vsel %vm789_vm3, %v801_v44, %v803_v50  ;;  %v806_v58 = vsel %vm789_vm3, %v803_v50, %v805_v56  ;;  %v553_v9 = vrot.slane %v2462_v20, 2  ;;  %v813_v16 = vrot.slane %v2527_v51, 3 }
  0x36   : > { %1909 = vmatmul.msk.f32.gmra.mxu1 %vm306_vm1, %v285_v47  ;;  %v802_v47 = vsel %vm789_vm3, %v799_v40, %v801_v44  ;;  %v815_v25 = vrot.slane %v2462_v20, 3  ;;  %v2719_v44 = vld [vmem:[%s2426_s23 + $0x98] sm:$0xff] }
  0x37   : > { %1914 = vmatmul.msk.f32.gmra.mxu2 %vm306_vm1, %v295_v48  ;;  %v544_v48 = vsel %vm523_vm2, %v541_v41, %v543_v45 }
  0x38   : > { %1904 = vmatmul.msk.f32.gmra.mxu0 %vm306_vm1, %v275_v52  ;;  %v545_v52 = vrot.slane %v2440_v10, 2  ;;  %v816_v29 = vsel %vm789_vm3, %v813_v16, %v815_v25 }
  0x39   : > { %1919 = vmatmul.msk.f32.gmra.mxu3 %vm306_vm1, %v305_v57  ;;  %v547_v57 = vrot.slane %v2457_v17, 2 }
  0x3a   : > { %v546_v55 = vsel %vm523_vm2, %v543_v45, %v545_v52 }
  0x3e   : > { %1910 = vmatmul.msk.f32.gmra.mxu1 %vm306_vm1, %v287_v59  ;;  %v548_v59 = vsel %vm523_vm2, %v545_v52, %v547_v57 }
  0x3f   : > { %1915 = vmatmul.msk.f32.gmra.mxu2 %vm306_vm1, %v297_v60  ;;  %v807_v60 = vrot.slane %v2440_v10, 3 }
  0x40   : > { %1905 = vmatmul.msk.f32.gmra.mxu0 %vm306_vm1, %v277_v63  ;;  %v550_v63 = vsel %vm523_vm2, %v547_v57, %v549_v61  ;;  %v2739_v57 = vld [vmem:[%s2426_s23 + $0xa0] sm:$0xff] }
  0x41   : > { %1958 = vmatmul.msk.f32.vlgmr.msrb.gmra.mxu3 %vm306_vm1, %v530_v0  ;;  %v808_v62 = vsel %vm789_vm3, %v805_v56, %v807_v60  ;;  %v821_v56 = vrot.slane %v2517_v46, 3 }
  0x46   : > { %1911 = vmatmul.msk.f32.gmra.mxu1 %vm306_vm1, %v289_v1  ;;  %v551_v1 = vrot.slane %v2527_v51, 2 }
  0x47   : > { %1916 = vmatmul.msk.f32.gmra.mxu2 %vm306_vm1, %v299_v2 }
  0x48   : > { %1906 = vmatmul.msk.f32.gmra.mxu0 %vm306_vm1, %v279_v4  ;;  %v552_v3 = vsel %vm523_vm2, %v549_v61, %v551_v1  ;;  %v811_v4 = vrot.slane %v2494_v36, 3 }
  0x49   : > { %1959 = vmatmul.msk.f32.gmra.mxu3 %vm306_vm1, %v532_v11 }
  0x4e   : > { %1920 = vmatmul.msk.f32.vlgmr.msrb.gmra.mxu1 %vm306_vm1, %v2448_v14  ;;  %v536_v14 = vsel %vm523_vm2, %v533_v19, %v535_v27 }
  0x4f   : > { %1939 = vmatmul.msk.f32.vlgmr.msrb.gmra.mxu2 %vm306_vm1, %v526_v8  ;;  %v555_v8 = vrot.slane %v2472_v23, 2 }
  0x50   : > { %1977 = vmatmul.msk.f32.vlgmr.msrb.gmra.mxu0 %vm306_vm1, %v792_v21  ;;  %v814_v21 = vsel %vm789_vm3, %v811_v4, %v813_v16 }
  0x51   : > { %1960 = vmatmul.msk.f32.gmra.mxu3 %vm306_vm1, %v534_v24 }
  0x56   : > { %1921 = vmatmul.msk.f32.gmra.mxu1 %vm306_vm1, %v2451_v15  ;;  %v538_v15 = vsel %vm523_vm2, %v535_v27, %v537_v31 }
  0x57   : > { %1940 = vmatmul.msk.f32.gmra.mxu2 %vm306_vm1, %v528_v26 }
  0x58   : > { %1978 = vmatmul.msk.f32.gmra.mxu0 %vm306_vm1, %v794_v28  ;;  %v557_v28 = vrot.slane %v2483_v30, 2 }
  0x59   : > { %1961 = vmatmul.msk.f32.gmra.mxu3 %vm306_vm1, %v536_v14 }
  0x5e   : > { %1922 = vmatmul.msk.f32.gmra.mxu1 %vm306_vm1, %v2469_v22 }
  0x5f   : > { %1941 = vmatmul.msk.f32.gmra.mxu2 %vm306_vm1, %v530_v0  ;;  %v809_v0 = vrot.slane %v2457_v17, 3 }
  0x60   : > { %1979 = vmatmul.msk.f32.gmra.mxu0 %vm306_vm1, %v796_v32  ;;  %v558_v32 = vsel %vm523_vm2, %v555_v8, %v557_v28 }
  0x61   : > { %1962 = vmatmul.msk.f32.gmra.mxu3 %vm306_vm1, %v538_v15  ;;  %v810_v2 = vsel %vm789_vm3, %v807_v60, %v809_v0  ;;  %v812_v12 = vsel %vm789_vm3, %v809_v0, %v811_v4  ;;  %v692_v60 = vrot.slane %v2739_v57, 2  ;;  %v1221_v4 = vrot.slane %v2532_v53, 5 }
  0x66   : > { %1923 = vmatmul.msk.f32.gmra.mxu1 %vm306_vm1, %v2499_v38 }
  0x67   : > { %1942 = vmatmul.msk.f32.gmra.mxu2 %vm306_vm1, %v532_v11  ;;  %v554_v11 = vsel %vm523_vm2, %v551_v1, %v553_v9  ;;  %v823_v1 = vrot.slane %v2719_v44, 3 }
  0x68   : > { %1980 = vmatmul.msk.f32.gmra.mxu0 %vm306_vm1, %v798_v37  ;;  %v559_v37 = vrot.slane %v2517_v46, 2 }
  0x69   : > { %1963 = vmatmul.msk.f32.gmra.mxu3 %vm306_vm1, %v540_v39 }
  0x6e   : > { %1924 = vmatmul.msk.f32.gmra.mxu1 %vm306_vm1, %v2532_v53 }
  0x6f   : > { %1943 = vmatmul.msk.f32.gmra.mxu2 %vm306_vm1, %v534_v24  ;;  %v556_v24 = vsel %vm523_vm2, %v553_v9, %v555_v8  ;;  %v1222_v9 = vrot.slane %v2429_v5, 5 }
  0x70   : > { %1981 = vmatmul.msk.f32.gmra.mxu0 %vm306_vm1, %v800_v42  ;;  %v560_v42 = vsel %vm523_vm2, %v557_v28, %v559_v37 }
  0x71   : > { %1964 = vmatmul.msk.f32.gmra.mxu3 %vm306_vm1, %v542_v43  ;;  %v1223_v8 = vsel %vm1220_vm4, %v1221_v4, %v1222_v9 }
  0x76   : > { %1925 = vmatmul.msk.f32.gmra.mxu1 %vm306_vm1, %v2429_v5 }
  0x77   : > { %1944 = vmatmul.msk.f32.gmra.mxu2 %vm306_vm1, %v536_v14 }
  0x78   : > { %1982 = vmatmul.msk.f32.gmra.mxu0 %vm306_vm1, %v802_v47 }
  0x79   : > { %1965 = vmatmul.msk.f32.gmra.mxu3 %vm306_vm1, %v544_v48 }
  0x7e   : > { %1926 = vmatmul.msk.f32.gmra.mxu1 %vm306_vm1, %v2432_v6 }
  0x7f   : > { %1945 = vmatmul.msk.f32.gmra.mxu2 %vm306_vm1, %v538_v15  ;;  %v817_v15 = vrot.slane %v2472_v23, 3 }
  0x80   : > { %1983 = vmatmul.msk.f32.gmra.mxu0 %vm306_vm1, %v804_v54 }
  0x81   : > { %1966 = vmatmul.msk.f32.gmra.mxu3 %vm306_vm1, %v546_v55  ;;  %v818_v40 = vsel %vm789_vm3, %v815_v25, %v817_v15 }
  0x86   : > { %1927 = vmatmul.msk.f32.gmra.mxu1 %vm306_vm1, %v2445_v13 }
  0x87   : > { %1946 = vmatmul.msk.f32.gmra.mxu2 %vm306_vm1, %v540_v39 }
  0x88   : > { %1984 = vmatmul.msk.f32.gmra.mxu0 %vm306_vm1, %v806_v58 }
  0x89   : > { %1967 = vmatmul.msk.f32.gmra.mxu3 %vm306_vm1, %v548_v59 }
  0x8e   : > { %1928 = vmatmul.msk.f32.gmra.mxu1 %vm306_vm1, %v2490_v34 }
  0x8f   : > { %1947 = vmatmul.msk.f32.gmra.mxu2 %vm306_vm1, %v542_v43  ;;  %v819_v43 = vrot.slane %v2483_v30, 3 }
  0x90   : > { %1985 = vmatmul.msk.f32.gmra.mxu0 %vm306_vm1, %v808_v62 }
  0x91   : > { %1968 = vmatmul.msk.f32.gmra.mxu3 %vm306_vm1, %v550_v63  ;;  %v820_v52 = vsel %vm789_vm3, %v817_v15, %v819_v43  ;;  %v822_v62 = vsel %vm789_vm3, %v819_v43, %v821_v56  ;;  %v1224_v15 = vrot.slane %v2432_v6, 5 }
  0x96   : > { %1929 = vmatmul.msk.f32.gmra.mxu1 %vm306_vm1, %v2523_v49 }
  0x97   : > { %1948 = vmatmul.msk.f32.gmra.mxu2 %vm306_vm1, %v544_v48  ;;  %v690_v48 = vrot.slane %v2719_v44, 2 }
  0x98   : > { %1986 = vmatmul.msk.f32.gmra.mxu0 %vm306_vm1, %v810_v2 }
  0x99   : > { %1969 = vmatmul.msk.f32.gmra.mxu3 %vm306_vm1, %v552_v3  ;;  %v693_v0 = vsel %vm523_vm2, %v690_v48, %v692_v60  ;;  %v958_v60 = vrot.slane %v2532_v53, 4 }
  0x9e   : > { %1930 = vmatmul.msk.f32.gmra.mxu1 %vm306_vm1, %v2435_v7 }
  0x9f   : > { %1949 = vmatmul.msk.f32.gmra.mxu2 %vm306_vm1, %v546_v55  ;;  %v691_v55 = vsel %vm523_vm2, %v559_v37, %v690_v48  ;;  %v1566_v48 = vld [vmem:[%s3175_s2] sm:$0xff] }
  0xa0   : > { %1987 = vmatmul.msk.f32.gmra.mxu0 %vm306_vm1, %v812_v12 }
  0xa1   : > { %1970 = vmatmul.msk.f32.gmra.mxu3 %vm306_vm1, %v554_v11 }
  0xa3   : > { %v2671_v18 = vpop.f32.mrf.mxu1 }
  0xa5   : > { %v2675_v19 = vpop.f32.mrf.mxu0 }
  0xa6   : > { %1931 = vmatmul.msk.f32.gmra.mxu1 %vm306_vm1, %v2440_v10 }
  0xa7   : > { %1950 = vmatmul.msk.f32.gmra.mxu2 %vm306_vm1, %v548_v59 }
  0xa8   : > { %1988 = vmatmul.msk.f32.gmra.mxu0 %vm306_vm1, %v814_v21 }
  0xa9   : > { %1971 = vmatmul.msk.f32.gmra.mxu3 %vm306_vm1, %v556_v24 }
  0xaa   : > { %v2684_v26 = vpop.f32.mrf.mxu2 }
  0xab   : > { %v2686_v27 = vpop.f32.mrf.mxu1 }
  0xac   : > { %v2695_v31 = vpop.f32.mrf.mxu3 }
  0xad   : > { %v2690_v14 = vpop.f32.mrf.mxu0 }
  0xae   : > { %1932 = vmatmul.msk.f32.gmra.mxu1 %vm306_vm1, %v2457_v17 }
  0xaf   : > { %1951 = vmatmul.msk.f32.gmra.mxu2 %vm306_vm1, %v550_v63 }
  0xb0   : > { %1989 = vmatmul.msk.f32.gmra.mxu0 %vm306_vm1, %v816_v29 }
  0xb1   : > { %1972 = vmatmul.msk.f32.gmra.mxu3 %vm306_vm1, %v558_v32 }
  0xb2   : > { %v2701_v33 = vpop.f32.mrf.mxu2 }
  0xb3   : > { %v2703_v35 = vpop.f32.mrf.mxu1 }
  0xb4   : > { %v2712_v41 = vpop.f32.mrf.mxu3 }
  0xb5   : > { %v2707_v39 = vpop.f32.mrf.mxu0 }
  0xb6   : > { %1933 = vmatmul.msk.f32.gmra.mxu1 %vm306_vm1, %v2494_v36 }
  0xb7   : > { %1952 = vmatmul.msk.f32.gmra.mxu2 %vm306_vm1, %v552_v3 }
  0xb8   : > { %1990 = vmatmul.msk.f32.gmra.mxu0 %vm306_vm1, %v818_v40 }
  0xb9   : > { %1973 = vmatmul.msk.f32.gmra.mxu3 %vm306_vm1, %v560_v42 }
  0xba   : > { %v2721_v45 = vpop.f32.mrf.mxu2 }
  0xbb   : > { %v2723_v47 = vpop.f32.mrf.mxu1 }
  0xbc   : > { %v2732_v54 = vpop.f32.mrf.mxu3 }
  0xbd   : > { %v2727_v50 = vpop.f32.mrf.mxu0 }
  0xbe   : > { %1934 = vmatmul.msk.f32.gmra.mxu1 %vm306_vm1, %v2527_v51 }
  0xbf   : > { %1953 = vmatmul.msk.f32.gmra.mxu2 %vm306_vm1, %v554_v11  ;;  %v824_v11 = vsel %vm789_vm3, %v821_v56, %v823_v1  ;;  %v956_v56 = vrot.slane %v2499_v38, 4 }
  0xc0   : > { %1991 = vmatmul.msk.f32.gmra.mxu0 %vm306_vm1, %v820_v52 }
  0xc1   : > { %1974 = vmatmul.msk.f32.gmra.mxu3 %vm306_vm1, %v691_v55  ;;  %v955_v55 = vrot.slane %v2469_v22, 4 }
  0xc2   : > { %v2741_v58 = vpop.f32.mrf.mxu2 }
  0xc3   : > { %v2743_v59 = vpop.f32.mrf.mxu1  ;;  %v957_v4 = vsel %vm954_vm5, %v955_v55, %v956_v56 }
  0xc4   : > { %v715_v63 = vpop.f32.mrf.mxu3 }
  0xc5   : > { %v2747_v61 = vpop.f32.mrf.mxu0 }
  0xc6   : > { %1935 = vmatmul.msk.f32.gmra.mxu1 %vm306_vm1, %v2462_v20 }
  0xc7   : > { %1954 = vmatmul.msk.f32.gmra.mxu2 %vm306_vm1, %v556_v24  ;;  %v825_v24 = vrot.slane %v2739_v57, 3 }
  0xc8   : > { %1992 = vmatmul.msk.f32.gmra.mxu0 %vm306_vm1, %v822_v62  ;;  %v960_v62 = vrot.slane %v2429_v5, 4 }
  0xc9   : > { %1975 = vmatmul.msk.f32.gmra.mxu3 %vm306_vm1, %v693_v0  ;;  %v826_v43 = vsel %vm789_vm3, %v823_v1, %v825_v24  ;;  %v1386_v1 = vrot.slane %v2532_v53, 6  ;;  %v962_v24 = vrot.slane %v2432_v6, 4 }
  0xca   : > { %v2756_v2 = vpop.f32.mrf.mxu2 }
  0xcb   : > { %v467_v3 = vpop.f32.mrf.mxu1 }
  0xcc   : > { %v718_v16 = vpop.f32.mrf.mxu3  ;;  %v468_v21 = vadd.f32 %v467_v3, %v2675_v19 }
  0xcd   : > { %v880_v12 = vpop.f32.mrf.mxu0 }
  0xce   : > { %1936 = vmatmul.msk.f32.gmra.mxu1 %vm306_vm1, %v2472_v23 }
  0xcf   : > { %1955 = vmatmul.msk.f32.gmra.mxu2 %vm306_vm1, %v558_v32  ;;  %v2297_v32 = vmov 0  }
  0xd0   : > { %1993 = vmatmul.msk.f32.gmra.mxu0 %vm306_vm1, %v824_v11  ;;  %2166 = vset.pattern.permute.xlu0 %v2297_v32  ;;  %v1226_v11 = vrot.slane %v2445_v13, 5 }
  0xd1   : > { %2034 = vmatmul.msk.f32.vlgmr.msra.gmra.mxu3 %vm306_vm1, %v1223_v8  ;;  %2167 = vset.pattern.permute.xlu1 %v2297_v32 }
  0xd2   : > { %v614_v25 = vpop.f32.mrf.mxu2  ;;  %1586 = vperm.xlu0 %2166, %v1566_v48   ;;  %2168 = vset.pattern.permute.xlu2 %v2297_v32  ;;  %v959_v32 = vsel %vm954_vm5, %v956_v56, %v958_v60  ;;  %v1228_v48 = vrot.slane %v2490_v34, 5  ;;  %v964_v56 = vrot.slane %v2445_v13, 4 }
  0xd3   : > { %v668_v28 = vadd.f32 %v614_v25, %v468_v21  ;;  %v470_v29 = vpop.f32.mrf.mxu1 }
  0xd4   : > { %v721_v19 = vpop.f32.mrf.mxu3  ;;  %v471_v0 = vadd.f32 %v470_v29, %v2690_v14 }
  0xd5   : > { %v769_v37 = vadd.f32 %v715_v63, %v668_v28  ;;  %v883_v40 = vpop.f32.mrf.mxu0  ;;  %v1225_v63 = vsel %vm1220_vm4, %v1222_v9, %v1224_v15  ;;  %v1389_v28 = vrot.slane %v2432_v6, 6 }
  0xd6   : > { %1937 = vmatmul.msk.f32.gmra.mxu1 %vm306_vm1, %v2483_v30 }
  0xd7   : > { %v2777_v52 = vadd.f32 %v880_v12, %v769_v37  ;;  %1956 = vmatmul.msk.f32.gmra.mxu2 %vm306_vm1, %v560_v42  ;;  %v1387_v42 = vrot.slane %v2429_v5, 6  ;;  %v961_v12 = vsel %vm954_vm5, %v958_v60, %v960_v62  ;;  %v1567_v5 = vld [vmem:[%s3175_s2 + $0x8] sm:$0xff] }
  0xd8   : > { %1994 = vmatmul.msk.f32.gmra.mxu0 %vm306_vm1, %v826_v43 }
  0xd9   : > { %2035 = vmatmul.msk.f32.gmra.mxu3 %vm306_vm1, %v1225_v63  ;;  %v1388_v14 = vsel %vm1385_vm6, %v1386_v1, %v1387_v42 }
  0xda   : > { %v617_v3 = vpop.f32.mrf.mxu2  ;;  %1591 = vperm.xlu0 %2166, %v1567_v5  }
  0xdb   : > { %v669_v22 = vadd.f32 %v617_v3, %v471_v0  ;;  %v473_v38 = vpop.f32.mrf.mxu1  ;;  %v1390_v0 = vsel %vm1385_vm6, %v1387_v42, %v1389_v28 }
  0xdc   : > { %v724_v53 = vpop.f32.mrf.mxu3  ;;  %v474_v25 = vadd.f32 %v473_v38, %v2707_v39  ;;  %v1568_v39 = vld [vmem:[%s3175_s2 + $0x10] sm:$0xff]  ;;  %v1230_v38 = vrot.slane %v2523_v49, 5 }
  0xdd   : > { %v770_v8 = vadd.f32 %v718_v16, %v669_v22  ;;  %v886_v9 = vpop.f32.mrf.mxu0  ;;  %v1227_v16 = vsel %vm1220_vm4, %v1224_v15, %v1226_v11  ;;  %1596 = vperm.xlu1 %2167, %v1568_v39   ;;  %v965_v22 = vsel %vm954_vm5, %v962_v24, %v964_v56 }
  0xde   : > { %1996 = vmatmul.msk.f32.vlgmr.msra.gmra.mxu1 %vm306_vm1, %v957_v4  ;;  %v1231_v5 = vsel %vm1220_vm4, %v1228_v48, %v1230_v38 }
  0xdf   : > { %v2798_v21 = vadd.f32 %v883_v40, %v770_v8  ;;  %2015 = vmatmul.msk.f32.vlgmr.msra.gmra.mxu2 %vm306_vm1, %v961_v12  ;;  %v963_v40 = vsel %vm954_vm5, %v960_v62, %v962_v24  ;;  %v1391_v62 = vrot.slane %v2445_v13, 6  ;;  %v1393_v24 = vrot.slane %v2490_v34, 6 }
  0xe0   : > { %2053 = vmatmul.msk.f32.vlgmr.msra.gmra.mxu0 %vm306_vm1, %v1388_v14  ;;  %v966_v14 = vrot.slane %v2490_v34, 4  ;;  %v968_v34 = vrot.slane %v2523_v49, 4 }
  0xe1   : > { %2036 = vmatmul.msk.f32.gmra.mxu3 %vm306_vm1, %v1227_v16 }
  0xe2   : > { %v620_v29 = vpop.f32.mrf.mxu2 }
  0xe3   : > { %v670_v37 = vadd.f32 %v620_v29, %v474_v25  ;;  %v476_v43 = vpop.f32.mrf.mxu1  ;;  %v1232_v29 = vrot.slane %v2435_v7, 5 }
  0xe4   : > { %v727_v6 = vpop.f32.mrf.mxu3  ;;  %v477_v60 = vadd.f32 %v476_v43, %v2727_v50 }
  0xe5   : > { %v771_v55 = vadd.f32 %v721_v19, %v670_v37  ;;  %v889_v63 = vpop.f32.mrf.mxu0  ;;  %v1229_v19 = vsel %vm1220_vm4, %v1226_v11, %v1228_v48  ;;  %v1569_v11 = vld [vmem:[%s3175_s2 + $0x18] sm:$0xff] }
  0xe6   : > { %1997 = vmatmul.msk.f32.gmra.mxu1 %vm306_vm1, %v959_v32  ;;  %1601 = vperm.xlu1 %2167, %v1569_v11   ;;  %v1394_v32 = vsel %vm1385_vm6, %v1391_v62, %v1393_v24 }
  0xe7   : > { %v2815_v15 = vadd.f32 %v886_v9, %v771_v55  ;;  %2016 = vmatmul.msk.f32.gmra.mxu2 %vm306_vm1, %v963_v40  ;;  %v1392_v9 = vsel %vm1385_vm6, %v1389_v28, %v1391_v62 }
  0xe8   : > { %2054 = vmatmul.msk.f32.gmra.mxu0 %vm306_vm1, %v1390_v0  ;;  %v1395_v0 = vrot.slane %v2523_v49, 6  ;;  %v970_v49 = vrot.slane %v2435_v7, 4 }
  0xe9   : > { %2037 = vmatmul.msk.f32.gmra.mxu3 %vm306_vm1, %v1229_v19  ;;  %v1234_v19 = vrot.slane %v2440_v10, 5 }
  0xea   : > { %v623_v1 = vpop.f32.mrf.mxu2 }
  0xeb   : > { %v671_v42 = vadd.f32 %v623_v1, %v477_v60  ;;  %v479_v3 = vpop.f32.mrf.mxu1  ;;  %v1396_v1 = vsel %vm1385_vm6, %v1393_v24, %v1395_v0  ;;  %v1572_v24 = vld [vmem:[%s3175_s2 + $0x30] sm:$0xff] }
  0xec   : > { %v730_v13 = vpop.f32.mrf.mxu3  ;;  %1616 = vperm.xlu0 %2166, %v1572_v24  }
  0xed   : > { %v772_v4 = vadd.f32 %v724_v53, %v671_v42  ;;  %v892_v8 = vpop.f32.mrf.mxu0  ;;  %v480_v53 = vadd.f32 %v479_v3, %v2747_v61  ;;  %v1233_v61 = vsel %vm1220_vm4, %v1230_v38, %v1232_v29 }
  0xee   : > { %1998 = vmatmul.msk.f32.gmra.mxu1 %vm306_vm1, %v961_v12  ;;  %v967_v12 = vsel %vm954_vm5, %v964_v56, %v966_v14 }
  0xef   : > { %v2831_v50 = vadd.f32 %v889_v63, %v772_v4  ;;  %2017 = vmatmul.msk.f32.gmra.mxu2 %vm306_vm1, %v965_v22  ;;  %v1397_v4 = vrot.slane %v2435_v7, 6 }
  0xf0   : > { %2055 = vmatmul.msk.f32.gmra.mxu0 %vm306_vm1, %v1392_v9 }
  0xf1   : > { %2038 = vmatmul.msk.f32.gmra.mxu3 %vm306_vm1, %v1231_v5 }
  0xf2   : > { %v626_v16 = vpop.f32.mrf.mxu2 }
  0xf3   : > { %v672_v25 = vadd.f32 %v626_v16, %v480_v53  ;;  %v482_v28 = vpop.f32.mrf.mxu1  ;;  %v1398_v53 = vsel %vm1385_vm6, %v1395_v0, %v1397_v4  ;;  %v972_v16 = vrot.slane %v2440_v10, 4  ;;  %v1570_v0 = vld [vmem:[%s3175_s2 + $0x20] sm:$0xff] }
  0xf4   : > { %v733_v48 = vpop.f32.mrf.mxu3  ;;  %v483_v63 = vadd.f32 %v482_v28, %v2671_v18  ;;  %v1235_v18 = vsel %vm1220_vm4, %v1232_v29, %v1234_v19  ;;  %v1399_v29 = vrot.slane %v2440_v10, 6  ;;  %v1573_v10 = vld [vmem:[%s3175_s2 + $0x38] sm:$0xff]  ;;  %1606 = vperm.xlu2 %2168, %v1570_v0  }
  0xf5   : > { %v773_v37 = vadd.f32 %v727_v6, %v672_v25  ;;  %v895_v43 = vpop.f32.mrf.mxu0  ;;  %1621 = vperm.xlu1 %2167, %v1573_v10   ;;  %v1244_v10 = vrot.slane %v2472_v23, 5 }
  0xf6   : > { %1999 = vmatmul.msk.f32.gmra.mxu1 %vm306_vm1, %v963_v40  ;;  %v969_v40 = vsel %vm954_vm5, %v966_v14, %v968_v34 }
  0xf7   : > { %v2844_v55 = vadd.f32 %v892_v8, %v773_v37  ;;  %2018 = vmatmul.msk.f32.gmra.mxu2 %vm306_vm1, %v967_v12 }
  0xf8   : > { %2056 = vmatmul.msk.f32.gmra.mxu0 %vm306_vm1, %v1394_v32 }
  0xf9   : > { %2039 = vmatmul.msk.f32.gmra.mxu3 %vm306_vm1, %v1233_v61 }
  0xfa   : > { %v629_v39 = vpop.f32.mrf.mxu2 }
  0xfb   : > { %v673_v6 = vadd.f32 %v629_v39, %v483_v63  ;;  %v485_v56 = vpop.f32.mrf.mxu1  ;;  %v1400_v63 = vsel %vm1385_vm6, %v1397_v4, %v1399_v29 }
  0xfc   : > { %v736_v42 = vpop.f32.mrf.mxu3  ;;  %v486_v38 = vadd.f32 %v485_v56, %v2686_v27 }
  0xfd   : > { %v774_v60 = vadd.f32 %v730_v13, %v673_v6  ;;  %v898_v62 = vpop.f32.mrf.mxu0  ;;  %v1236_v13 = vrot.slane %v2457_v17, 5  ;;  %v974_v6 = vrot.slane %v2457_v17, 4 }
  0xfe   : > { %2000 = vmatmul.msk.f32.gmra.mxu1 %vm306_vm1, %v965_v22  ;;  %v971_v22 = vsel %vm954_vm5, %v968_v34, %v970_v49 }
  0xff   : > { %v2857_v3 = vadd.f32 %v895_v43, %v774_v60  ;;  %2019 = vmatmul.msk.f32.gmra.mxu2 %vm306_vm1, %v969_v40  ;;  %v1237_v25 = vsel %vm1220_vm4, %v1234_v19, %v1236_v13  ;;  %v1401_v60 = vrot.slane %v2457_v17, 6 }
 0x100   : > { %2057 = vmatmul.msk.f32.gmra.mxu0 %vm306_vm1, %v1396_v1 }
 0x101   : > { %2040 = vmatmul.msk.f32.gmra.mxu3 %vm306_vm1, %v1235_v18  ;;  %v1402_v4 = vsel %vm1385_vm6, %v1399_v29, %v1401_v60  ;;  %v1575_v29 = vld [vmem:[%s3175_s2 + $0x48] sm:$0xff] }
 0x102   : > { %v632_v8 = vpop.f32.mrf.mxu2  ;;  %1631 = vperm.xlu0 %2166, %v1575_v29  }
 0x103   : > { %v674_v9 = vadd.f32 %v632_v8, %v486_v38  ;;  %v488_v11 = vpop.f32.mrf.mxu1  ;;  %v1571_v8 = vld [vmem:[%s3175_s2 + $0x28] sm:$0xff] }
 0x104   : > { %v739_v7 = vpop.f32.mrf.mxu3  ;;  %v489_v28 = vadd.f32 %v488_v11, %v2703_v35  ;;  %1611 = vperm.xlu2 %2168, %v1571_v8   ;;  %v1246_v8 = vrot.slane %v2483_v30, 5 }
 0x105   : > { %v775_v14 = vadd.f32 %v733_v48, %v674_v9  ;;  %v901_v5 = vpop.f32.mrf.mxu0  ;;  %v1238_v48 = vrot.slane %v2494_v36, 5  ;;  %v976_v9 = vrot.slane %v2494_v36, 4 }
 0x106   : > { %2001 = vmatmul.msk.f32.gmra.mxu1 %vm306_vm1, %v967_v12  ;;  %v973_v12 = vsel %vm954_vm5, %v970_v49, %v972_v16  ;;  %v1240_v49 = vrot.slane %v2527_v51, 5 }
 0x107   : > { %v2873_v27 = vadd.f32 %v898_v62, %v775_v14  ;;  %2020 = vmatmul.msk.f32.gmra.mxu2 %vm306_vm1, %v971_v22  ;;  %v1239_v56 = vsel %vm1220_vm4, %v1236_v13, %v1238_v48  ;;  %v1403_v14 = vrot.slane %v2494_v36, 6 }
 0x108   : > { %2058 = vmatmul.msk.f32.gmra.mxu0 %vm306_vm1, %v1398_v53  ;;  %v1241_v11 = vsel %vm1220_vm4, %v1238_v48, %v1240_v49  ;;  %v1405_v48 = vrot.slane %v2527_v51, 6 }
 0x109   : > { %2041 = vmatmul.msk.f32.gmra.mxu3 %vm306_vm1, %v1237_v25 }
 0x10a   : > { %v635_v37 = vpop.f32.mrf.mxu2 }
 0x10b   : > { %v675_v43 = vadd.f32 %v635_v37, %v489_v28  ;;  %v491_v32 = vpop.f32.mrf.mxu1  ;;  %v1404_v28 = vsel %vm1385_vm6, %v1401_v60, %v1403_v14  ;;  %v978_v37 = vrot.slane %v2527_v51, 4  ;;  %v980_v60 = vrot.slane %v2462_v20, 4 }
 0x10c   : > { %v742_v35 = vpop.f32.mrf.mxu3  ;;  %v492_v19 = vadd.f32 %v491_v32, %v2723_v47 }
 0x10d   : > { %v776_v34 = vadd.f32 %v736_v42, %v675_v43  ;;  %v904_v61 = vpop.f32.mrf.mxu0  ;;  %v975_v42 = vsel %vm954_vm5, %v972_v16, %v974_v6  ;;  %v979_v0 = vsel %vm954_vm5, %v976_v9, %v978_v37 }
 0x10e   : > { %2002 = vmatmul.msk.f32.gmra.mxu1 %vm306_vm1, %v969_v40 }
 0x10f   : > { %v2892_v39 = vadd.f32 %v901_v5, %v776_v34  ;;  %2021 = vmatmul.msk.f32.gmra.mxu2 %vm306_vm1, %v973_v12 }
 0x110   : > { %2059 = vmatmul.msk.f32.gmra.mxu0 %vm306_vm1, %v1400_v63 }
 0x111   : > { %2042 = vmatmul.msk.f32.gmra.mxu3 %vm306_vm1, %v1239_v56 }
 0x112   : > { %v638_v62 = vpop.f32.mrf.mxu2 }
 0x113   : > { %v676_v1 = vadd.f32 %v638_v62, %v492_v19  ;;  %v494_v40 = vpop.f32.mrf.mxu1  ;;  %v1578_v19 = vld [vmem:[%s3175_s2 + $0x60] sm:$0xff] }
 0x114   : > { %v745_v17 = vpop.f32.mrf.mxu3  ;;  %v495_v13 = vadd.f32 %v494_v40, %v2743_v59  ;;  %1646 = vperm.xlu0 %2166, %v1578_v19   ;;  %v1407_v40 = vrot.slane %v2462_v20, 6 }
 0x115   : > { %v777_v18 = vadd.f32 %v739_v7, %v676_v1  ;;  %v907_v38 = vpop.f32.mrf.mxu0  ;;  %v1242_v7 = vrot.slane %v2462_v20, 5  ;;  %v1574_v20 = vld [vmem:[%s3175_s2 + $0x40] sm:$0xff] }
 0x116   : > { %2003 = vmatmul.msk.f32.gmra.mxu1 %vm306_vm1, %v971_v22  ;;  %v977_v22 = vsel %vm954_vm5, %v974_v6, %v976_v9  ;;  %1626 = vperm.xlu2 %2168, %v1574_v20  }
 0x117   : > { %v2908_v47 = vadd.f32 %v904_v61, %v777_v18  ;;  %2022 = vmatmul.msk.f32.gmra.mxu2 %vm306_vm1, %v975_v42  ;;  %v1243_v43 = vsel %vm1220_vm4, %v1240_v49, %v1242_v7  ;;  %v1245_v62 = vsel %vm1220_vm4, %v1242_v7, %v1244_v10 }
 0x118   : > { %2060 = vmatmul.msk.f32.gmra.mxu0 %vm306_vm1, %v1402_v4  ;;  %v981_v4 = vsel %vm954_vm5, %v978_v37, %v980_v60 }
 0x119   : > { %2043 = vmatmul.msk.f32.gmra.mxu3 %vm306_vm1, %v1241_v11 }
 0x11a   : > { %v641_v5 = vpop.f32.mrf.mxu2 }
 0x11b   : > { %v677_v53 = vadd.f32 %v641_v5, %v495_v13  ;;  %v497_v24 = vpop.f32.mrf.mxu1  ;;  %v982_v5 = vrot.slane %v2472_v23, 4 }
 0x11c   : > { %v748_v36 = vpop.f32.mrf.mxu3  ;;  %v498_v32 = vadd.f32 %v497_v24, %v2684_v26  ;;  %v1406_v26 = vsel %vm1385_vm6, %v1403_v14, %v1405_v48  ;;  %v1581_v14 = vld [vmem:[%s3175_s2 + $0x78] sm:$0xff] }
 0x11d   : > { %v778_v16 = vadd.f32 %v742_v35, %v677_v53  ;;  %v910_v25 = vpop.f32.mrf.mxu0  ;;  %v1247_v53 = vsel %vm1220_vm4, %v1244_v10, %v1246_v8  ;;  %1661 = vperm.xlu0 %2166, %v1581_v14   ;;  %v983_v29 = vsel %vm954_vm5, %v980_v60, %v982_v5  ;;  %v1577_v60 = vld [vmem:[%s3175_s2 + $0x58] sm:$0xff] }
 0x11e   : > { %2004 = vmatmul.msk.f32.gmra.mxu1 %vm306_vm1, %v973_v12  ;;  %v1576_v12 = vld [vmem:[%s3175_s2 + $0x50] sm:$0xff]  ;;  %1641 = vperm.xlu2 %2168, %v1577_v60  }
 0x11f   : > { %v2924_v59 = vadd.f32 %v907_v38, %v778_v16  ;;  %2023 = vmatmul.msk.f32.gmra.mxu2 %vm306_vm1, %v977_v22  ;;  %1636 = vperm.xlu1 %2167, %v1576_v12   ;;  %v1579_v38 = vld [vmem:[%s3175_s2 + $0x68] sm:$0xff] }
 0x120   : > { %2061 = vmatmul.msk.f32.gmra.mxu0 %vm306_vm1, %v1404_v28  ;;  %v1582_v28 = vld [vmem:[%s3175_s2 + $0x80] sm:$0xff] }
 0x121   : > { %2044 = vmatmul.msk.f32.gmra.mxu3 %vm306_vm1, %v1243_v43 }
 0x122   : > { %v644_v34 = vpop.f32.mrf.mxu2 }
 0x123   : > { %v678_v61 = vadd.f32 %v644_v34, %v498_v32  ;;  %v500_v63 = vpop.f32.mrf.mxu1 }
 0x124   : > { %v751_v51 = vpop.f32.mrf.mxu3  ;;  %v501_v1 = vadd.f32 %v500_v63, %v2701_v33  ;;  %v1408_v33 = vsel %vm1385_vm6, %v1405_v48, %v1407_v40  ;;  %v984_v48 = vrot.slane %v2483_v30, 4  ;;  %v1411_v63 = vrot.slane %v2483_v30, 6 }
 0x125   : > { %v779_v35 = vadd.f32 %v745_v17, %v678_v61  ;;  %v913_v6 = vpop.f32.mrf.mxu0 }
 0x126   : > { %2005 = vmatmul.msk.f32.gmra.mxu1 %vm306_vm1, %v975_v42 }
 0x127   : > { %v2940_v56 = vadd.f32 %v910_v25, %v779_v35  ;;  %2024 = vmatmul.msk.f32.gmra.mxu2 %vm306_vm1, %v979_v0  ;;  %1651 = vperm.xlu1 %2167, %v1579_v38  }
 0x128   : > { %2062 = vmatmul.msk.f32.gmra.mxu0 %vm306_vm1, %v1406_v26 }
 0x129   : > { %2045 = vmatmul.msk.f32.gmra.mxu3 %vm306_vm1, %v1245_v62  ;;  %v986_v62 = vrot.slane %v2517_v46, 4 }
 0x12a   : > { %v647_v42 = vpop.f32.mrf.mxu2 }
 0x12b   : > { %v679_v49 = vadd.f32 %v647_v42, %v501_v1  ;;  %v503_v18 = vpop.f32.mrf.mxu1  ;;  %v1413_v42 = vrot.slane %v2517_v46, 6 }
 0x12c   : > { %v754_v11 = vpop.f32.mrf.mxu3  ;;  %v504_v24 = vadd.f32 %v503_v18, %v2721_v45 }
 0x12d   : > { %v780_v17 = vadd.f32 %v748_v36, %v679_v49  ;;  %v916_v9 = vpop.f32.mrf.mxu0  ;;  %v1248_v36 = vrot.slane %v2517_v46, 5 }
 0x12e   : > { %2006 = vmatmul.msk.f32.gmra.mxu1 %vm306_vm1, %v977_v22  ;;  %v1409_v22 = vrot.slane %v2472_v23, 6 }
 0x12f   : > { %v2962_v13 = vadd.f32 %v913_v6, %v780_v17  ;;  %2025 = vmatmul.msk.f32.gmra.mxu2 %vm306_vm1, %v981_v4  ;;  %1666 = vperm.xlu1 %2167, %v1582_v28   ;;  %v1249_v34 = vsel %vm1220_vm4, %v1246_v8, %v1248_v36  ;;  %v1250_v6 = vrot.slane %v2719_v44, 5  ;;  %v1252_v8 = vrot.slane %v2739_v57, 5 }
 0x130   : > { %2063 = vmatmul.msk.f32.gmra.mxu0 %vm306_vm1, %v1408_v33  ;;  %v1410_v45 = vsel %vm1385_vm6, %v1407_v40, %v1409_v22  ;;  %v1412_v19 = vsel %vm1385_vm6, %v1409_v22, %v1411_v63  ;;  %v1414_v33 = vsel %vm1385_vm6, %v1411_v63, %v1413_v42 }
 0x131   : > { %2046 = vmatmul.msk.f32.gmra.mxu3 %vm306_vm1, %v1247_v53  ;;  %v1251_v1 = vsel %vm1220_vm4, %v1248_v36, %v1250_v6  ;;  %v1253_v14 = vsel %vm1220_vm4, %v1250_v6, %v1252_v8  ;;  %v1415_v53 = vrot.slane %v2719_v44, 6 }
 0x132   : > { %v650_v7 = vpop.f32.mrf.mxu2 }
 0x133   : > { %v680_v16 = vadd.f32 %v650_v7, %v504_v24  ;;  %v506_v25 = vpop.f32.mrf.mxu1 }
 0x134   : > { %v757_v23 = vpop.f32.mrf.mxu3  ;;  %v507_v61 = vadd.f32 %v506_v25, %v2741_v58 }
 0x135   : > { %v781_v37 = vadd.f32 %v751_v51, %v680_v16  ;;  %v919_v43 = vpop.f32.mrf.mxu0  ;;  %v3023_v16 = vld [vmem:[%s2426_s23 + $0xa8] sm:$0xff] }
 0x136   : > { %2007 = vmatmul.msk.f32.gmra.mxu1 %vm306_vm1, %v979_v0  ;;  %v985_v0 = vsel %vm954_vm5, %v982_v5, %v984_v48  ;;  %v1254_v28 = vrot.slane %v3023_v16, 5 }
 0x137   : > { %v2981_v32 = vadd.f32 %v916_v9, %v781_v37  ;;  %2026 = vmatmul.msk.f32.gmra.mxu2 %vm306_vm1, %v983_v29  ;;  %v1416_v37 = vsel %vm1385_vm6, %v1413_v42, %v1415_v53 }
 0x138   : > { %2064 = vmatmul.msk.f32.gmra.mxu0 %vm306_vm1, %v1410_v45  ;;  %v990_v45 = vrot.slane %v2739_v57, 4 }
 0x139   : > { %2047 = vmatmul.msk.f32.gmra.mxu3 %vm306_vm1, %v1249_v34  ;;  %v1417_v34 = vrot.slane %v2739_v57, 6 }
 0x13a   : > { %v653_v12 = vpop.f32.mrf.mxu2 }
 0x13b   : > { %v681_v10 = vadd.f32 %v653_v12, %v507_v61  ;;  %v509_v35 = vpop.f32.mrf.mxu1 }
 0x13c   : > { %v760_v30 = vpop.f32.mrf.mxu3  ;;  %v510_v40 = vadd.f32 %v509_v35, %v2756_v2  ;;  %v1580_v2 = vld [vmem:[%s3175_s2 + $0x70] sm:$0xff] }
 0x13d   : > { %v782_v26 = vadd.f32 %v754_v11, %v681_v10  ;;  %v922_v51 = vpop.f32.mrf.mxu0  ;;  %1656 = vperm.xlu2 %2168, %v1580_v2   ;;  %v988_v11 = vrot.slane %v2719_v44, 4  ;;  %v245_v10 = vld [vmem:[%s2426_s23 + $0xb0] sm:$0xff]  ;;  %s3178_s23 = sand.u32 1, %s2271_s16  }
 0x13e   : > { %2008 = vmatmul.msk.f32.gmra.mxu1 %vm306_vm1, %v981_v4  ;;  %v987_v4 = vsel %vm954_vm5, %v984_v48, %v986_v62  ;;  %s2079_s24 = smul.u32 144, %s3178_s23 }
 0x13f   : > { %v2997_v58 = vadd.f32 %v919_v43, %v782_v26  ;;  %2027 = vmatmul.msk.f32.gmra.mxu2 %vm306_vm1, %v985_v0  ;;  %v989_v25 = vsel %vm954_vm5, %v986_v62, %v988_v11  ;;  %v991_v35 = vsel %vm954_vm5, %v988_v11, %v990_v45  ;;  %v1419_v62 = vrot.slane %v3023_v16, 6 }
 0x140   : > { %2065 = vmatmul.msk.f32.gmra.mxu0 %vm306_vm1, %v1412_v19  ;;  %s3071_s28 = scalar_lea.vmem [#allocation2], %s2079_s24 }
 0x141   : > { %2048 = vmatmul.msk.f32.gmra.mxu3 %vm306_vm1, %v1251_v1 }
 0x142   : > { %v656_v49 = vpop.f32.mrf.mxu2 }
 0x143   : > { %v682_v18 = vadd.f32 %v656_v49, %v510_v40  ;;  %v512_v38 = vpop.f32.mrf.mxu1 }
 0x144   : > { %v763_v46 = vpop.f32.mrf.mxu3  ;;  %v513_v5 = vadd.f32 %v512_v38, %v2695_v31  ;;  %v1583_v31 = vld [vmem:[%s3175_s2 + $0x88] sm:$0xff] }
 0x145   : > { %v783_v17 = vadd.f32 %v757_v23, %v682_v18  ;;  %v925_v9 = vpop.f32.mrf.mxu0  ;;  %1671 = vperm.xlu2 %2168, %v1583_v31   ;;  %v1255_v23 = vsel %vm1220_vm4, %v1252_v8, %v1254_v28 }
 0x146   : > { %2009 = vmatmul.msk.f32.gmra.mxu1 %vm306_vm1, %v983_v29 }
 0x147   : > { %v3013_v20 = vadd.f32 %v922_v51, %v783_v17  ;;  %2028 = vmatmul.msk.f32.gmra.mxu2 %vm306_vm1, %v987_v4  ;;  %v1418_v51 = vsel %vm1385_vm6, %v1415_v53, %v1417_v34 }
 0x148   : > { %2066 = vmatmul.msk.f32.gmra.mxu0 %vm306_vm1, %v1414_v33  ;;  %v1421_v33 = vrot.slane %v245_v10, 6 }
 0x149   : > { %2049 = vmatmul.msk.f32.gmra.mxu3 %vm306_vm1, %v1253_v14 }
 0x14a   : > { %v659_v24 = vpop.f32.mrf.mxu2 }
 0x14b   : > { %v683_v22 = vadd.f32 %v659_v24, %v513_v5  ;;  %v515_v7 = vpop.f32.mrf.mxu1  ;;  %v1587_v5 = vpop.permute.xlu0 %1586 }
 0x14c   : > { %v766_v44 = vpop.f32.mrf.mxu3  ;;  %v516_v48 = vadd.f32 %v515_v7, %v2712_v41  ;;  %v1121_v41 = vrot.slane %v3023_v16, 4 }
 0x14d   : > { %v784_v29 = vadd.f32 %v760_v30, %v683_v22  ;;  %v928_v36 = vpop.f32.mrf.mxu0  ;;  %v1422_v22 = vsel %vm1385_vm6, %v1419_v62, %v1421_v33 }
 0x14e   : > { %2010 = vmatmul.msk.f32.gmra.mxu1 %vm306_vm1, %v985_v0  ;;  %v1256_v0 = vrot.slane %v245_v10, 5  ;;  %v1122_v49 = vsel %vm954_vm5, %v990_v45, %v1121_v41 }
 0x14f   : > { %v3032_v43 = vadd.f32 %v925_v9, %v784_v29  ;;  %2029 = vmatmul.msk.f32.gmra.mxu2 %vm306_vm1, %v989_v25 }
 0x150   : > { %2067 = vmatmul.msk.f32.gmra.mxu0 %vm306_vm1, %v1416_v37  ;;  %v1257_v57 = vsel %vm1220_vm4, %v1254_v28, %v1256_v0  ;;  %v1597_v0 = vpop.permute.xlu1 %1596 }
 0x151   : > { %2050 = vmatmul.msk.f32.gmra.mxu3 %vm306_vm1, %v1255_v23 }
 0x152   : > { %v662_v61 = vpop.f32.mrf.mxu2 }
 0x153   : > { %v684_v63 = vadd.f32 %v662_v61, %v516_v48  ;;  %v518_v12 = vpop.f32.mrf.mxu1  ;;  %v1592_v31 = vpop.permute.xlu0 %1591 }
 0x154   : > { %v1311_v19 = vpop.f32.mrf.mxu3  ;;  %v519_v30 = vadd.f32 %v518_v12, %v2732_v54  ;;  %v1123_v54 = vrot.slane %v245_v10, 4 }
 0x155   : > { %v785_v6 = vadd.f32 %v763_v46, %v684_v63  ;;  %v931_v26 = vpop.f32.mrf.mxu0 }
 0x156   : > { %2011 = vmatmul.msk.f32.gmra.mxu1 %vm306_vm1, %v987_v4  ;;  %v1420_v4 = vsel %vm1385_vm6, %v1417_v34, %v1419_v62  ;;  %v1124_v14 = vsel %vm954_vm5, %v1121_v41, %v1123_v54 }
 0x157   : > { %v3045_v60 = vadd.f32 %v928_v36, %v785_v6  ;;  %2030 = vmatmul.msk.f32.gmra.mxu2 %vm306_vm1, %v991_v35 }
 0x158   : > { %2068 = vmatmul.msk.f32.gmra.mxu0 %vm306_vm1, %v1418_v51 }
 0x159   : > { %2051 = vmatmul.msk.f32.gmra.mxu3 %vm306_vm1, %v1257_v57 }
 0x15a   : > { %v665_v1 = vpop.f32.mrf.mxu2 }
 0x15b   : > { %v685_v40 = vadd.f32 %v665_v1, %v519_v30  ;;  %v1045_v42 = vpop.f32.mrf.mxu1 }
 0x15c   : > { %v1314_v8 = vpop.f32.mrf.mxu3  ;;  %v1099_v9 = vadd.f32 %v1045_v42, %v2777_v52 }
 0x15d   : > { %v786_v18 = vadd.f32 %v766_v44, %v685_v40  ;;  %v1476_v38 = vpop.f32.mrf.mxu0 }
 0x15e   : > { %2012 = vmatmul.msk.f32.gmra.mxu1 %vm306_vm1, %v989_v25 }
 0x15f   : > { %v3057_v17 = vadd.f32 %v931_v26, %v786_v18  ;;  %2031 = vmatmul.msk.f32.gmra.mxu2 %vm306_vm1, %v1122_v49 }
 0x160   : > { %2069 = vmatmul.msk.f32.gmra.mxu0 %vm306_vm1, %v1420_v4  ;;  %v1602_v4 = vpop.permute.xlu1 %1601 }
 0x162   : > { %v1146_v2 = vpop.f32.mrf.mxu2 }
 0x163   : > { %v1200_v46 = vadd.f32 %v1146_v2, %v1099_v9  ;;  %v1048_v11 = vpop.f32.mrf.mxu1 }
 0x164   : > { %v1317_v7 = vpop.f32.mrf.mxu3  ;;  %v1100_v52 = vadd.f32 %v1048_v11, %v2798_v21 }
 0x165   : > { %v1365_v53 = vadd.f32 %v1311_v19, %v1200_v46  ;;  %v1479_v24 = vpop.f32.mrf.mxu0 }
 0x166   : > { %2013 = vmatmul.msk.f32.gmra.mxu1 %vm306_vm1, %v991_v35 }
 0x167   : > { %v1530_v16 = vadd.f32 %v1476_v38, %v1365_v53  ;;  %2032 = vmatmul.msk.f32.gmra.mxu2 %vm306_vm1, %v1124_v14 }
 0x168   : > { %2070 = vmatmul.msk.f32.gmra.mxu0 %vm306_vm1, %v1422_v22 }
 0x169   : > { %1548 = vst [vmem:[%s3071_s28] sm:$0xff] %v1530_v16  ;;  %v1674_v45 = vmul.f32 %v1587_v5, %v1530_v16  ;;  %v1607_v5 = vpop.permute.xlu2 %1606 }
 0x16a   : > { %v1149_v25 = vpop.f32.mrf.mxu2 }
 0x16b   : > { %v1201_v28 = vadd.f32 %v1149_v25, %v1100_v52  ;;  %v1051_v29 = vpop.f32.mrf.mxu1  ;;  %v1715_v61 = vmul.f32 %v1674_v45, %v1530_v16 }
 0x16c   : > { %v1320_v44 = vpop.f32.mrf.mxu3  ;;  %v1101_v48 = vadd.f32 %v1051_v29, %v2815_v15 }
 0x16d   : > { %v1366_v36 = vadd.f32 %v1314_v8, %v1201_v28  ;;  %v1482_v37 = vpop.f32.mrf.mxu0 }
 0x16f   : > { %v1531_v23 = vadd.f32 %v1479_v24, %v1366_v36 }
 0x171   : > { %1549 = vst [vmem:[%s3071_s28 + $0x8] sm:$0xff] %v1531_v23  ;;  %v1675_v34 = vmul.f32 %v1592_v31, %v1531_v23 }
 0x172   : > { %v1152_v21 = vpop.f32.mrf.mxu2 }
 0x173   : > { %v1692_v63 = vadd.f32 %v1675_v34, %v1674_v45  ;;  %v1716_v12 = vmul.f32 %v1675_v34, %v1531_v23  ;;  %v1202_v10 = vadd.f32 %v1152_v21, %v1101_v48  ;;  %v1054_v35 = vpop.f32.mrf.mxu1  ;;  %v1612_v23 = vpop.permute.xlu2 %1611 }
 0x174   : > { %v1323_v19 = vpop.f32.mrf.mxu3  ;;  %v1102_v57 = vadd.f32 %v1054_v35, %v2831_v50 }
 0x175   : > { %v1733_v6 = vadd.f32 %v1716_v12, %v1715_v61  ;;  %v1367_v26 = vadd.f32 %v1317_v7, %v1202_v10  ;;  %v1485_v51 = vpop.f32.mrf.mxu0 }
 0x177   : > { %v1532_v41 = vadd.f32 %v1482_v37, %v1367_v26 }
 0x179   : > { %1550 = vst [vmem:[%s3071_s28 + $0x10] sm:$0xff] %v1532_v41  ;;  %v1676_v15 = vmul.f32 %v1597_v0, %v1532_v41 }
 0x17a   : > { %v1155_v30 = vpop.f32.mrf.mxu2 }
 0x17b   : > { %v1693_v62 = vadd.f32 %v1692_v63, %v1676_v15  ;;  %v1717_v1 = vmul.f32 %v1676_v15, %v1532_v41  ;;  %v1203_v40 = vadd.f32 %v1155_v30, %v1102_v57  ;;  %v1057_v42 = vpop.f32.mrf.mxu1 }
 0x17c   : > { %v1326_v8 = vpop.f32.mrf.mxu3  ;;  %v1103_v9 = vadd.f32 %v1057_v42, %v2844_v55 }
 0x17d   : > { %v1734_v49 = vadd.f32 %v1733_v6, %v1717_v1  ;;  %v1368_v18 = vadd.f32 %v1320_v44, %v1203_v40  ;;  %v1488_v38 = vpop.f32.mrf.mxu0 }
 0x17f   : > { %v1533_v54 = vadd.f32 %v1485_v51, %v1368_v18  ;;  %v1617_v51 = vpop.permute.xlu0 %1616 }
 0x181   : > { %1551 = vst [vmem:[%s3071_s28 + $0x18] sm:$0xff] %v1533_v54  ;;  %v1677_v33 = vmul.f32 %v1602_v4, %v1533_v54 }
 0x182   : > { %v1158_v50 = vpop.f32.mrf.mxu2 }
 0x183   : > { %v1694_v2 = vadd.f32 %v1693_v62, %v1677_v33  ;;  %v1718_v46 = vmul.f32 %v1677_v33, %v1533_v54  ;;  %v1204_v11 = vadd.f32 %v1158_v50, %v1103_v9  ;;  %v1060_v14 = vpop.f32.mrf.mxu1 }
 0x184   : > { %v1329_v7 = vpop.f32.mrf.mxu3  ;;  %v1104_v16 = vadd.f32 %v1060_v14, %v2857_v3 }
 0x185   : > { %v1735_v53 = vadd.f32 %v1734_v49, %v1718_v46  ;;  %v1369_v24 = vadd.f32 %v1323_v19, %v1204_v11  ;;  %v1491_v22 = vpop.f32.mrf.mxu0 }
 0x187   : > { %v1534_v55 = vadd.f32 %v1488_v38, %v1369_v24  ;;  %v1622_v38 = vpop.permute.xlu1 %1621 }
 0x189   : > { %1552 = vst [vmem:[%s3071_s28 + $0x20] sm:$0xff] %v1534_v55  ;;  %v1678_v52 = vmul.f32 %v1607_v5, %v1534_v55 }
 0x18a   : > { %v1161_v25 = vpop.f32.mrf.mxu2 }
 0x18b   : > { %v1695_v28 = vadd.f32 %v1694_v2, %v1678_v52  ;;  %v1719_v29 = vmul.f32 %v1678_v52, %v1534_v55  ;;  %v1205_v36 = vadd.f32 %v1161_v25, %v1104_v16  ;;  %v1063_v37 = vpop.f32.mrf.mxu1 }
 0x18c   : > { %v1332_v48 = vpop.f32.mrf.mxu3  ;;  %v1105_v21 = vadd.f32 %v1063_v37, %v2873_v27 }
 0x18d   : > { %v1736_v31 = vadd.f32 %v1735_v53, %v1719_v29  ;;  %v1370_v44 = vadd.f32 %v1326_v8, %v1205_v36  ;;  %v1494_v45 = vpop.f32.mrf.mxu0  ;;  %v1627_v53 = vpop.permute.xlu2 %1626 }
 0x18f   : > { %v1535_v34 = vadd.f32 %v1491_v22, %v1370_v44 }
 0x191   : > { %1553 = vst [vmem:[%s3071_s28 + $0x28] sm:$0xff] %v1535_v34  ;;  %v1679_v61 = vmul.f32 %v1612_v23, %v1535_v34 }
 0x192   : > { %v1164_v63 = vpop.f32.mrf.mxu2 }
 0x193   : > { %v1696_v3 = vadd.f32 %v1695_v28, %v1679_v61  ;;  %v1720_v12 = vmul.f32 %v1679_v61, %v1535_v34  ;;  %v1206_v10 = vadd.f32 %v1164_v63, %v1105_v21  ;;  %v1066_v35 = vpop.f32.mrf.mxu1 }
 0x194   : > { %v1335_v19 = vpop.f32.mrf.mxu3  ;;  %v1106_v57 = vadd.f32 %v1066_v35, %v2892_v39 }
 0x195   : > { %v1737_v0 = vadd.f32 %v1736_v31, %v1720_v12  ;;  %v1371_v6 = vadd.f32 %v1329_v7, %v1206_v10  ;;  %v1497_v26 = vpop.f32.mrf.mxu0  ;;  %v1632_v31 = vpop.permute.xlu0 %1631 }
 0x197   : > { %v1536_v41 = vadd.f32 %v1494_v45, %v1371_v6 }
 0x199   : > { %1554 = vst [vmem:[%s3071_s28 + $0x30] sm:$0xff] %v1536_v41  ;;  %v1680_v15 = vmul.f32 %v1617_v51, %v1536_v41 }
 0x19a   : > { %v1167_v30 = vpop.f32.mrf.mxu2 }
 0x19b   : > { %v1697_v27 = vadd.f32 %v1696_v3, %v1680_v15  ;;  %v1721_v62 = vmul.f32 %v1680_v15, %v1536_v41  ;;  %v1207_v1 = vadd.f32 %v1167_v30, %v1106_v57  ;;  %v1069_v40 = vpop.f32.mrf.mxu1 }
 0x19c   : > { %v1338_v4 = vpop.f32.mrf.mxu3  ;;  %v1107_v54 = vadd.f32 %v1069_v40, %v2908_v47  ;;  %v1642_v40 = vpop.permute.xlu2 %1641 }
 0x19d   : > { %v1738_v42 = vadd.f32 %v1737_v0, %v1721_v62  ;;  %v1372_v49 = vadd.f32 %v1332_v48, %v1207_v1  ;;  %v1500_v18 = vpop.f32.mrf.mxu0  ;;  %v1637_v0 = vpop.permute.xlu1 %1636 }
 0x19f   : > { %v1537_v8 = vadd.f32 %v1497_v26, %v1372_v49 }
 0x1a1   : > { %1555 = vst [vmem:[%s3071_s28 + $0x38] sm:$0xff] %v1537_v8  ;;  %v1681_v9 = vmul.f32 %v1622_v38, %v1537_v8 }
 0x1a2   : > { %v1170_v33 = vpop.f32.mrf.mxu2 }
 0x1a3   : > { %v1698_v39 = vadd.f32 %v1697_v27, %v1681_v9  ;;  %v1722_v50 = vmul.f32 %v1681_v9, %v1537_v8  ;;  %v1208_v2 = vadd.f32 %v1170_v33, %v1107_v54  ;;  %v1072_v46 = vpop.f32.mrf.mxu1 }
 0x1a4   : > { %v1341_v24 = vpop.f32.mrf.mxu3  ;;  %v1108_v7 = vadd.f32 %v1072_v46, %v2924_v59 }
 0x1a5   : > { %v1739_v11 = vadd.f32 %v1738_v42, %v1722_v50  ;;  %v1373_v14 = vadd.f32 %v1335_v19, %v1208_v2  ;;  %v1503_v5 = vpop.f32.mrf.mxu0  ;;  %v1647_v2 = vpop.permute.xlu0 %1646 }
 0x1a7   : > { %v1538_v22 = vadd.f32 %v1500_v18, %v1373_v14 }
 0x1a9   : > { %1556 = vst [vmem:[%s3071_s28 + $0x40] sm:$0xff] %v1538_v22  ;;  %v1682_v55 = vmul.f32 %v1627_v53, %v1538_v22 }
 0x1aa   : > { %v1173_v16 = vpop.f32.mrf.mxu2 }
 0x1ab   : > { %v1699_v47 = vadd.f32 %v1698_v39, %v1682_v55  ;;  %v1723_v52 = vmul.f32 %v1682_v55, %v1538_v22  ;;  %v1209_v25 = vadd.f32 %v1173_v16, %v1108_v7  ;;  %v1075_v28 = vpop.f32.mrf.mxu1 }
 0x1ac   : > { %v1344_v44 = vpop.f32.mrf.mxu3  ;;  %v1109_v23 = vadd.f32 %v1075_v28, %v2940_v56 }
 0x1ad   : > { %v1740_v29 = vadd.f32 %v1739_v11, %v1723_v52  ;;  %v1374_v36 = vadd.f32 %v1338_v4, %v1209_v25  ;;  %v1506_v37 = vpop.f32.mrf.mxu0  ;;  %v1652_v52 = vpop.permute.xlu1 %1651 }
 0x1af   : > { %v1539_v45 = vadd.f32 %v1503_v5, %v1374_v36 }
 0x1b1   : > { %1557 = vst [vmem:[%s3071_s28 + $0x48] sm:$0xff] %v1539_v45  ;;  %v1683_v48 = vmul.f32 %v1632_v31, %v1539_v45 }
 0x1b2   : > { %v1176_v34 = vpop.f32.mrf.mxu2 }
 0x1b3   : > { %v1700_v59 = vadd.f32 %v1699_v47, %v1683_v48  ;;  %v1724_v21 = vmul.f32 %v1683_v48, %v1539_v45  ;;  %v1210_v61 = vadd.f32 %v1176_v34, %v1109_v23  ;;  %v1078_v63 = vpop.f32.mrf.mxu1  ;;  %v1657_v34 = vpop.permute.xlu2 %1656 }
 0x1b4   : > { %v1347_v6 = vpop.f32.mrf.mxu3  ;;  %v1110_v26 = vadd.f32 %v1078_v63, %v2962_v13 }
 0x1b5   : > { %v1741_v3 = vadd.f32 %v1740_v29, %v1724_v21  ;;  %v1375_v12 = vadd.f32 %v1341_v24, %v1210_v61  ;;  %v1509_v10 = vpop.f32.mrf.mxu0 }
 0x1b7   : > { %v1540_v35 = vadd.f32 %v1506_v37, %v1375_v12 }
 0x1b9   : > { %1558 = vst [vmem:[%s3071_s28 + $0x50] sm:$0xff] %v1540_v35  ;;  %v1684_v51 = vmul.f32 %v1637_v0, %v1540_v35 }
 0x1ba   : > { %v1179_v19 = vpop.f32.mrf.mxu2 }
 0x1bb   : > { %v1701_v56 = vadd.f32 %v1700_v59, %v1684_v51  ;;  %v1725_v41 = vmul.f32 %v1684_v51, %v1540_v35  ;;  %v1211_v57 = vadd.f32 %v1179_v19, %v1110_v26  ;;  %v1081_v15 = vpop.f32.mrf.mxu1  ;;  %v1662_v26 = vpop.permute.xlu0 %1661 }
 0x1bc   : > { %v1111_v42 = vadd.f32 %v1081_v15, %v2981_v32  ;;  %v1350_v38 = vpop.f32.mrf.mxu3 }
 0x1bd   : > { %v1742_v30 = vadd.f32 %v1741_v3, %v1725_v41  ;;  %v1376_v27 = vadd.f32 %v1344_v44, %v1211_v57  ;;  %v1512_v62 = vpop.f32.mrf.mxu0 }
 0x1bf   : > { %v1541_v1 = vadd.f32 %v1509_v10, %v1376_v27 }
 0x1c1   : > { %1559 = vst [vmem:[%s3071_s28 + $0x58] sm:$0xff] %v1541_v1  ;;  %v1685_v49 = vmul.f32 %v1642_v40, %v1541_v1 }
 0x1c2   : > { %v1182_v18 = vpop.f32.mrf.mxu2 }
 0x1c3   : > { %v1702_v13 = vadd.f32 %v1701_v56, %v1685_v49  ;;  %v1726_v4 = vmul.f32 %v1685_v49, %v1541_v1  ;;  %v1212_v8 = vadd.f32 %v1182_v18, %v1111_v42  ;;  %v1084_v54 = vpop.f32.mrf.mxu1  ;;  %v1667_v42 = vpop.permute.xlu1 %1666 }
 0x1c4   : > { %v1112_v46 = vadd.f32 %v1084_v54, %v2997_v58  ;;  %v1353_v22 = vpop.f32.mrf.mxu3 }
 0x1c5   : > { %v1743_v9 = vadd.f32 %v1742_v30, %v1726_v4  ;;  %v1377_v33 = vadd.f32 %v1347_v6, %v1212_v8  ;;  %v1515_v39 = vpop.f32.mrf.mxu0 }
 0x1c7   : > { %v1542_v50 = vadd.f32 %v1512_v62, %v1377_v33 }
 0x1c9   : > { %1560 = vst [vmem:[%s3071_s28 + $0x60] sm:$0xff] %v1542_v50  ;;  %v1686_v11 = vmul.f32 %v1647_v2, %v1542_v50 }
 0x1ca   : > { %v1185_v14 = vpop.f32.mrf.mxu2 }
 0x1cb   : > { %v1703_v32 = vadd.f32 %v1702_v13, %v1686_v11  ;;  %v1727_v5 = vmul.f32 %v1686_v11, %v1542_v50  ;;  %v1213_v53 = vadd.f32 %v1185_v14, %v1112_v46  ;;  %v1087_v24 = vpop.f32.mrf.mxu1  ;;  %v1672_v50 = vpop.permute.xlu2 %1671 }
 0x1cc   : > { %v1113_v25 = vadd.f32 %v1087_v24, %v3013_v20  ;;  %v1356_v23 = vpop.f32.mrf.mxu3 }
 0x1cd   : > { %v1744_v7 = vadd.f32 %v1743_v9, %v1727_v5  ;;  %v1378_v55 = vadd.f32 %v1350_v38, %v1213_v53  ;;  %v1518_v16 = vpop.f32.mrf.mxu0 }
 0x1cf   : > { %v1543_v47 = vadd.f32 %v1515_v39, %v1378_v55 }
 0x1d1   : > { %1561 = vst [vmem:[%s3071_s28 + $0x68] sm:$0xff] %v1543_v47  ;;  %v1687_v28 = vmul.f32 %v1652_v52, %v1543_v47 }
 0x1d2   : > { %v1188_v29 = vpop.f32.mrf.mxu2 }
 0x1d3   : > { %v1704_v58 = vadd.f32 %v1703_v32, %v1687_v28  ;;  %v1728_v36 = vmul.f32 %v1687_v28, %v1543_v47  ;;  %v1214_v37 = vadd.f32 %v1188_v29, %v1113_v25  ;;  %v1090_v31 = vpop.f32.mrf.mxu1 }
 0x1d4   : > { %v1114_v21 = vadd.f32 %v1090_v31, %v3032_v43  ;;  %v1359_v51 = vpop.f32.mrf.mxu3 }
 0x1d5   : > { %v1745_v44 = vadd.f32 %v1744_v7, %v1728_v36  ;;  %v1379_v45 = vadd.f32 %v1353_v22, %v1214_v37  ;;  %v1521_v59 = vpop.f32.mrf.mxu0 }
 0x1d7   : > { %v1544_v48 = vadd.f32 %v1518_v16, %v1379_v45 }
 0x1d9   : > { %1562 = vst [vmem:[%s3071_s28 + $0x70] sm:$0xff] %v1544_v48  ;;  %v1688_v61 = vmul.f32 %v1657_v34, %v1544_v48 }
 0x1da   : > { %v1191_v63 = vpop.f32.mrf.mxu2 }
 0x1db   : > { %v1705_v20 = vadd.f32 %v1704_v58, %v1688_v61  ;;  %v1729_v3 = vmul.f32 %v1688_v61, %v1544_v48  ;;  %v1215_v12 = vadd.f32 %v1191_v63, %v1114_v21  ;;  %v1093_v10 = vpop.f32.mrf.mxu1 }
 0x1dc   : > { %v1115_v19 = vadd.f32 %v1093_v10, %v3045_v60  ;;  %v1362_v13 = vpop.f32.mrf.mxu3 }
 0x1dd   : > { %v1746_v35 = vadd.f32 %v1745_v44, %v1729_v3  ;;  %v1380_v0 = vadd.f32 %v1356_v23, %v1215_v12  ;;  %v1524_v57 = vpop.f32.mrf.mxu0 }
 0x1df   : > { %v1545_v6 = vadd.f32 %v1521_v59, %v1380_v0 }
 0x1e1   : > { %1563 = vst [vmem:[%s3071_s28 + $0x78] sm:$0xff] %v1545_v6  ;;  %v1689_v56 = vmul.f32 %v1662_v26, %v1545_v6 }
 0x1e2   : > { %v1194_v41 = vpop.f32.mrf.mxu2 }
 0x1e3   : > { %v1706_v43 = vadd.f32 %v1705_v20, %v1689_v56  ;;  %v1730_v15 = vmul.f32 %v1689_v56, %v1545_v6  ;;  %v1216_v30 = vadd.f32 %v1194_v41, %v1115_v19  ;;  %v1096_v1 = vpop.f32.mrf.mxu1 }
 0x1e4   : > { %v1116_v49 = vadd.f32 %v1096_v1, %v3057_v17 }
 0x1e5   : > { %v1747_v27 = vadd.f32 %v1746_v35, %v1730_v15  ;;  %v1381_v62 = vadd.f32 %v1359_v51, %v1216_v30  ;;  %v1527_v54 = vpop.f32.mrf.mxu0 }
 0x1e7   : > { %v1546_v40 = vadd.f32 %v1524_v57, %v1381_v62 }
 0x1e9   : > { %1564 = vst [vmem:[%s3071_s28 + $0x80] sm:$0xff] %v1546_v40  ;;  %v1690_v18 = vmul.f32 %v1667_v42, %v1546_v40 }
 0x1ea   : > { %v1197_v38 = vpop.f32.mrf.mxu2 }
 0x1eb   : > { %v1707_v60 = vadd.f32 %v1706_v43, %v1690_v18  ;;  %v1731_v4 = vmul.f32 %v1690_v18, %v1546_v40  ;;  %v1217_v8 = vadd.f32 %v1197_v38, %v1116_v49 }
 0x1ed   : > { %v1748_v9 = vadd.f32 %v1747_v27, %v1731_v4  ;;  %v1382_v33 = vadd.f32 %v1362_v13, %v1217_v8 }
 0x1ef   : > { %v1547_v39 = vadd.f32 %v1527_v54, %v1382_v33 }
 0x1f1   : > { %1565 = vst [vmem:[%s3071_s28 + $0x88] sm:$0xff] %v1547_v39  ;;  %v1691_v2 = vmul.f32 %v1672_v50, %v1547_v39 }
 0x1f3   : > { %v1708_v46 = vadd.f32 %v1707_v60, %v1691_v2  ;;  %v1732_v11 = vmul.f32 %v1691_v2, %v1547_v39 }
 0x1f5   : > { %v1709_v14 = vrot.slane %v1708_v46, 4  ;;  %v1749_v32 = vadd.f32 %v1748_v9, %v1732_v11 }
 0x1f7   : > { %v1710_v5 = vadd.f32 %v1709_v14, %v1708_v46  ;;  %v1750_v17 = vrot.slane %v1749_v32, 4 }
 0x1f9   : > { %v1711_v53 = vrot.slane %v1710_v5, 2  ;;  %v1751_v24 = vadd.f32 %v1750_v17, %v1749_v32 }
 0x1fb   : > { %v1712_v22 = vadd.f32 %v1711_v53, %v1710_v5  ;;  %v1752_v7 = vrot.slane %v1751_v24, 2 }
 0x1fd   : > { %v1713_v55 = vrot.slane %v1712_v22, 1  ;;  %v1753_v16 = vadd.f32 %v1752_v7, %v1751_v24 }
 0x1ff   : > { %v1754_v47 = vrot.slane %v1753_v16, 1  ;;  %v1714_v52 = vadd.f32 %v1713_v55, %v1712_v22  ;;  %1763 = sbr.rel (%p3082_p4) target bundleno = 518 (0x206), region = 36 }
 0x201   : > { %v1755_v25 = vadd.f32 %v1754_v47, %v1753_v16 }
 0x203   : > { %v1757_v28 = vsel %vm1756_vm7, %v1714_v52, %v1755_v25 }
 0x204   : > { %v2298_v29 = vmov 0.0  }
 0x205   : > { %1764 = vst [vmem:[#allocation4] sm:$0x3] %v2298_v29 }
 0x206 PF: > { %s2082_s6 = smul.u32 18, %s2279_s18  ;;  %s1783_s9 = sshll.u32 %s3071_s28, 4  ;;  %s3118_s9 = int_to_ptr.vmem [resolvable:$true] %s1783_s9 }
 0x207   : > { %s2083_s7 = smul.u32 36, %s2283_s19  ;;  %s2299_s5 = smov [#allocation4]  }
 0x208   : > { %s1798_s23 = sshll.u32 %s2299_s5, 4  ;;  %s3187_s0 = sand.u32 1, %s2271_s16   ;;  %s1799_s23 = int_to_ptr.vmem [resolvable:$true] %s1798_s23 }
 0x209   : > { %s1780_s10 = sadd.s32 %s2083_s7, %s2082_s6  ;;  %s1769_s18 = scalar_lea.sflag [#allocation3], %s3187_s0 }
 0x20a   : > { %s2071_s11 = sshll.u32 %s1780_s10, 3  ;;  %s2189_s7 = scalar_lea.hbm %s3176_s3, 576 }
 0x20b   : > { %s1782_s14 = scalar_lea.hbm %s3176_s3, %s2071_s11 }
 0x20c   : > { %v1765_v58 = vld [vmem:[#allocation4] sm:$0x3]  ;;  %s1785_s24 = sshll.u32 %s1782_s14, 4  ;;  %s1786_s24 = int_to_ptr.hbm [resolvable:$true] %s1785_s24 }
 0x20d   : > { %v1766_v36 = vadd.f32 %v1765_v58, %v1757_v28  ;;  %s2183_s1 = sshra.s32 %s1786_s24, 4  ;;  %s2184_s1 = int_to_ptr.hbm [resolvable:$true] %s2183_s1 }
 0x20e   : > { %s2185_s19 = scalar_lea.hbm %s2184_s1, 144  ;;  %p2190_p9 = scmp.lt.s32.totalorder %s2184_s1, %s3176_s3 }
 0x20f   : > { %1767 = vst [vmem:[#allocation4] sm:$0x3] %v1766_v36  ;;  %p2186_p5 = scmp.ne.s32.totalorder %s2184_s1, %s2185_s19  ;;  %p2191_p10 = scmp.lt.s32.totalorder %s2189_s7, %s2185_s19 }
 0x211   : > { %p2187_p6 = pnand %p2186_p5, %p2384_p3  ;;  %p2192_p11 = por %p2191_p10, %p2190_p9 }
 0x213   : > { %p2188_p7 = pneg %p2187_p6 }
 0x215   : > { %p2193_p12 = pnand %p2192_p11, %p2188_p7 }
 0x217   : > { %2196 = shalt.err (!%p2193_p12)
}
 0x218   : > { %s2300_s0 = smov 128   ;;  %s2301_s12 = smov 8  }
 0x219   : > { %2084 = dma.vmem_to_hbm [thread:$0]  (%p2384_p3), %s3118_s9, 2304, %s1786_s24, %s1769_s18, %s2300_s0, %s2300_s0, %s2301_s12  }
 0x21a   : > { %s1800_s5 = sshll.u32 %s3177_s4, 4  ;;  %s1801_s5 = int_to_ptr.hbm [resolvable:$true] %s1800_s5 }
 0x21b   : > { %2086 = dma.vmem_to_hbm [thread:$0]  (%p2373_p2), %s1799_s23, 32, %s1801_s5, [#allocation5]  }
 0x21c   : > { %2258 = dma.done.wait (%p2373_p2), [#allocation5], 32  }
 0x21d   : > { %2260 = vsyncadd (%p2373_p2), [#allocation5], 4294967264 }
 0x21e PF: > { %p2096_p13 = scmp.ge.s32.totalorder %s2295_s22, 2  ;;  %s1817_s1 = sand.u32 1, %s2267_s15  }
 0x21f   : > { %s1818_s29 = scalar_lea.sflag [#allocation3], %s1817_s1 }
 0x220   : > { %p2091_p3 = pnand %p2096_p13, %p2393_p8 }
 0x222   : > { %p2092_p0 = pneg %p2091_p3 }
 0x224   : > { %2262 = dma.done.wait (%p2092_p0), %s1818_s29, 2304  }
 0x225   : > { %2264 = vsyncadd (%p2092_p0), %s1818_s29, 4294964992  ;;  %s19_s22 = sadd.s32 1, %s2295_s22   ;;  %s3188_s15 = smov %s2271_s16 }
 0x226   : > { %p16_p1 = scmp.ge.s32.totalorder %s19_s22, 6   ;;  %s3189_s16 = smov %s2275_s17 }
 0x227   : > { %s3190_s17 = smov %s2402_s8  ;;  %s3191_s18 = smov %s2287_s20 }
 0x228   : > { %s3192_s19 = smov %s2291_s21  ;;  %s3193_s20 = smov %s3196_s25 }
 0x229   : > { %s3194_s21 = smov %s3200_s26  ;;  %18 = sbr.rel (!%p16_p1) target bundleno = 9 (0x9), region = 87 }
 0x22e   :  { %1824 = vsyncpa [#allocation3], 1 }
 0x22f   :  { %1826 = vsyncpa [#allocation3 + $0x1], 1 }
 0x230   :  { %1827 = vsyncpa [#allocation5], 1 }

</bundles_post_ra>
